<compile_context>
chip_gen: v7x
topology: tpu7x:2x2x1
jax: 0.10.0
libtpu: 0.0.40
codegen_flags: <defaults>
</compile_context>

<pallas_src>
import functools

import numpy as np
import jax
import jax.numpy as jnp
from jax.experimental import pallas as pl
from jax.experimental.pallas import tpu as pltpu

_EPS = 1e-5      # PyTorch BatchNorm1d default eps
_SLOPE = 0.2     # LeakyReLU negative slope
_LANE = 128


# ----------------------------------------------------------------------------
# In-kernel helpers
# ----------------------------------------------------------------------------
def _lrelu(x):
    return jnp.maximum(x, _SLOPE * x)


def _shifted_copies(xb):
    """Build x[l-1] / x[l+1] copies with zero 'same'-padding at the sequence ends.

    Sublane slice + concat only (XLU-class data movement; no MXU shift matmuls,
    no (L, L) buffers).
    """
    l, c = xb.shape
    zero = jnp.zeros((1, c), xb.dtype)
    x_m1 = jnp.concatenate([zero, xb[: l - 1, :]], axis=0)   # row l -> x[l-1], row 0 -> 0
    x_p1 = jnp.concatenate([xb[1:, :], zero], axis=0)        # row l -> x[l+1], row L-1 -> 0
    return x_m1, x_p1


def _conv3(xb, w_ref):
    """3-tap 'same' 1-D conv as a single implicit GEMM.

    xb: (L, Cin) bf16 activation.  w_ref: (3*Cin, Cout) bf16 stacked taps
    (tap k in rows [k*Cin, (k+1)*Cin), pairing with x[l-1+k]).  One K=3*Cin dot
    replaces three K=Cin dots.  Returns f32 (L, Cout).
    """
    x_m1, x_p1 = _shifted_copies(xb)
    xcat = jnp.concatenate([x_m1, xb, x_p1], axis=1)          # (L, 3*Cin) lane concat
    return jnp.dot(xcat, w_ref[...], preferred_element_type=jnp.float32)


def _partial_stats(y):
    """(2, C) per-grid-step BN partials from the f32 accumulator: [sum; sum of squares]."""
    return jnp.concatenate([jnp.sum(y, axis=0, keepdims=True),
                            jnp.sum(y * y, axis=0, keepdims=True)], axis=0)


# ----------------------------------------------------------------------------
# Fused kernels (3 pallas_calls per residual block)
# ----------------------------------------------------------------------------
def _stage1_learned_kernel(x_ref, w0_ref, ws_ref, y0_ref, s0_ref, ys_ref, ss_ref):
    xb = x_ref[0].astype(jnp.bfloat16)          # bf16 MXU operands, f32 accumulation
    y0 = _conv3(xb, w0_ref)                     # conv_0 (implicit GEMM)
    y0_ref[0] = y0.astype(jnp.bfloat16)         # bf16 intermediate in HBM
    s0_ref[0] = _partial_stats(y0)              # stats from the f32 accumulator
    ys = jnp.dot(xb, ws_ref[...], preferred_element_type=jnp.float32)   # conv_s (1x1)
    ys_ref[0] = ys.astype(jnp.bfloat16)
    ss_ref[0] = _partial_stats(ys)


def _stage1_identity_kernel(x_ref, w0_ref, y0_ref, s0_ref):
    xb = x_ref[0].astype(jnp.bfloat16)
    y0 = _conv3(xb, w0_ref)
    y0_ref[0] = y0.astype(jnp.bfloat16)
    s0_ref[0] = _partial_stats(y0)


def _stage2_kernel(y0_ref, sc0_ref, sh0_ref, w1_ref, y1_ref, s1_ref):
    # Fused bn_0 (prefolded per-channel scale/shift) + leaky-relu prologue, then conv_1.
    h = _lrelu(y0_ref[0].astype(jnp.float32) * sc0_ref[...] + sh0_ref[...])
    y1 = _conv3(h.astype(jnp.bfloat16), w1_ref)
    y1_ref[0] = y1.astype(jnp.bfloat16)
    s1_ref[0] = _partial_stats(y1)


def _finalize_learned_kernel(y1_ref, sc1_ref, sh1_ref, ys_ref, scs_ref, shs_ref,
                             o_ref, *, ratio):
    dx = y1_ref[0].astype(jnp.float32) * sc1_ref[...] + sh1_ref[...]   # bn_1
    xs = ys_ref[0].astype(jnp.float32) * scs_ref[...] + shs_ref[...]   # bn_s
    o_ref[0] = _lrelu(xs + ratio * dx)


def _finalize_identity_kernel(y1_ref, sc1_ref, sh1_ref, x_ref, o_ref, *, ratio):
    dx = y1_ref[0].astype(jnp.float32) * sc1_ref[...] + sh1_ref[...]
    o_ref[0] = _lrelu(x_ref[0] + ratio * dx)


# ----------------------------------------------------------------------------
# Host-side helpers: padding, weight packing, BN folding, compiler params
# ----------------------------------------------------------------------------
def _round_up(n, m=_LANE):
    return ((n + m - 1) // m) * m


def _pad_last(a, n):
    a = jnp.asarray(a, jnp.float32)
    pad = n - a.shape[-1]
    if pad == 0:
        return a
    return jnp.pad(a, [(0, 0)] * (a.ndim - 1) + [(0, pad)])


def _pack_taps_stacked(w, cin_p, cout_p):
    # PyTorch Conv1d weight (Cout, Cin, K=3) -> (3*Cin_p, Cout_p) bf16 stacked taps.
    t = jnp.transpose(jnp.asarray(w, jnp.float32), (2, 1, 0))           # (3, Cin, Cout)
    t = jnp.pad(t, ((0, 0), (0, cin_p - t.shape[1]), (0, cout_p - t.shape[2])))
    return t.reshape(3 * cin_p, cout_p).astype(jnp.bfloat16)


def _bn_scale_shift(stats, gamma, beta, inv_n):
    """Fold train-mode BatchNorm1d (biased var, eps=1e-5) into per-channel scale/shift.

    stats: (B, 2, C) per-batch partial [sum; sumsq].  gamma/beta are zero on padded
    lanes, which forces the BN output on pad lanes to exactly 0 -- required so the
    zero-padded channels stay harmless through conv_1 (do NOT change that padding).
    """
    s = jnp.sum(stats, axis=0)                                # tiny (B,2,C)->(2,C) reduce
    mean = s[0:1] * inv_n
    var = jnp.maximum(s[1:2] * inv_n - mean * mean, 0.0)      # clamp: cancellation guard
    scale = gamma * jax.lax.rsqrt(var + _EPS)
    shift = beta - mean * scale
    return scale, shift                                       # each (1, C) f32


def _mosaic_params():
    # Explicit VMEM budget (~3/4 of physical: ~48 MiB on v7x, ~96 MiB on v5e/v6e).
    try:
        cap = int(pltpu.get_tpu_info().vmem_capacity_bytes)
    except Exception:  # pragma: no cover - conservative fallback
        cap = 64 << 20
    return pltpu.CompilerParams(
        dimension_semantics=("parallel",),
        vmem_limit_bytes=min((cap * 3) // 4, 96 << 20))


def make_block_params(key, fin, fout, fhidden=None):
    if fhidden is None:
        fhidden = min(fin, fout)
    learned = fin != fout
    cin_p, chid_p, cout_p = _round_up(fin), _round_up(fhidden), _round_up(fout)
    k = jax.random.split(key, 9)

    w0 = jax.random.normal(k[0], (fhidden, fin, 3), jnp.float32) / np.sqrt(3 * fin)
    w1 = jax.random.normal(k[1], (fout, fhidden, 3), jnp.float32) / np.sqrt(3 * fhidden)
    g0 = 1.0 + 0.1 * jax.random.normal(k[2], (fhidden,), jnp.float32)
    b0 = 0.1 * jax.random.normal(k[3], (fhidden,), jnp.float32)
    g1 = 1.0 + 0.1 * jax.random.normal(k[4], (fout,), jnp.float32)
    b1 = 0.1 * jax.random.normal(k[5], (fout,), jnp.float32)

    ref = {"w0": w0, "w1": w1, "g0": g0, "b0": b0, "g1": g1, "b1": b1}
    params = {
        "fin": fin, "fout": fout, "fhidden": fhidden, "learned_shortcut": learned,
        "cin_p": cin_p, "chid_p": chid_p, "cout_p": cout_p,
        "w0_taps": _pack_taps_stacked(w0, cin_p, chid_p),
        "w1_taps": _pack_taps_stacked(w1, chid_p, cout_p),
        # gamma/beta zero-padded on the padded lanes (see _bn_scale_shift).
        "g0": _pad_last(g0[None, :], chid_p), "b0": _pad_last(b0[None, :], chid_p),
        "g1": _pad_last(g1[None, :], cout_p), "b1": _pad_last(b1[None, :], cout_p),
        "ref": ref,
    }
    if learned:
        ws = jax.random.normal(k[6], (fout, fin, 1), jnp.float32) / np.sqrt(fin)
        gs = 1.0 + 0.1 * jax.random.normal(k[7], (fout,), jnp.float32)
        bs = 0.1 * jax.random.normal(k[8], (fout,), jnp.float32)
        ref.update({"ws": ws, "gs": gs, "bs": bs})
        pad_w = jnp.pad(jnp.transpose(ws[:, :, 0]),
                        ((0, cin_p - fin), (0, cout_p - fout)))
        params["ws"] = pad_w.astype(jnp.bfloat16)
        params["gs"] = _pad_last(gs[None, :], cout_p)
        params["bs"] = _pad_last(bs[None, :], cout_p)
    return params


# ----------------------------------------------------------------------------
# Forward pass
# ----------------------------------------------------------------------------
def conv1d_residual_block_forward_padded(xp, params, res_ratio=0.1):
    """Block forward on padded channels-last input (B, L, cin_p) f32 -> (B, L, cout_p) f32.

    Chained blocks stay in this layout; NCL <-> NLC transpose + channel pad/slice
    happen only at the network boundary.
    """
    B, L, cin_p = xp.shape
    assert cin_p == params["cin_p"], (cin_p, params["cin_p"])
    chid_p, cout_p = params["chid_p"], params["cout_p"]
    learned = params["learned_shortcut"]
    inv_n = 1.0 / float(B * L)
    f32, bf16 = jnp.float32, jnp.bfloat16
    cparams = _mosaic_params()

    row = lambda c: pl.BlockSpec((1, L, c), lambda b: (b, 0, 0))
    stat = lambda c: pl.BlockSpec((1, 2, c), lambda b: (b, 0, 0))
    vec = lambda c: pl.BlockSpec((1, c), lambda b: (0, 0))
    wspec = lambda kk, n: pl.BlockSpec((kk, n), lambda b: (0, 0))

    # ---- stage 1: conv_0 (+ conv_s) with per-batch partial BN statistics ----
    if learned:
        y0, s0, ys, ss = pl.pallas_call(
            _stage1_learned_kernel,
            grid=(B,),
            in_specs=[row(cin_p), wspec(3 * cin_p, chid_p), wspec(cin_p, cout_p)],
            out_specs=(row(chid_p), stat(chid_p), row(cout_p), stat(cout_p)),
            out_shape=(jax.ShapeDtypeStruct((B, L, chid_p), bf16),
                       jax.ShapeDtypeStruct((B, 2, chid_p), f32),
                       jax.ShapeDtypeStruct((B, L, cout_p), bf16),
                       jax.ShapeDtypeStruct((B, 2, cout_p), f32)),
            compiler_params=cparams,
        )(xp, params["w0_taps"], params["ws"])
    else:
        y0, s0 = pl.pallas_call(
            _stage1_identity_kernel,
            grid=(B,),
            in_specs=[row(cin_p), wspec(3 * cin_p, chid_p)],
            out_specs=(row(chid_p), stat(chid_p)),
            out_shape=(jax.ShapeDtypeStruct((B, L, chid_p), bf16),
                       jax.ShapeDtypeStruct((B, 2, chid_p), f32)),
            compiler_params=cparams,
        )(xp, params["w0_taps"])

    # Stats reduction + BN folding hoisted out of the kernels (tiny XLA ops).
    sc0, sh0 = _bn_scale_shift(s0, params["g0"], params["b0"], inv_n)

    # ---- stage 2: fused bn_0 + lrelu prologue, then conv_1 + its partial stats ----
    y1, s1 = pl.pallas_call(
        _stage2_kernel,
        grid=(B,),
        in_specs=[row(chid_p), vec(chid_p), vec(chid_p), wspec(3 * chid_p, cout_p)],
        out_specs=(row(cout_p), stat(cout_p)),
        out_shape=(jax.ShapeDtypeStruct((B, L, cout_p), bf16),
                   jax.ShapeDtypeStruct((B, 2, cout_p), f32)),
        compiler_params=cparams,
    )(y0, sc0, sh0, params["w1_taps"])

    sc1, sh1 = _bn_scale_shift(s1, params["g1"], params["b1"], inv_n)

    # ---- finalize: bn_1 (+ bn_s) + residual + lrelu, single elementwise pass ----
    if learned:
        scs, shs = _bn_scale_shift(ss, params["gs"], params["bs"], inv_n)
        out = pl.pallas_call(
            functools.partial(_finalize_learned_kernel, ratio=res_ratio),
            grid=(B,),
            in_specs=[row(cout_p), vec(cout_p), vec(cout_p),
                      row(cout_p), vec(cout_p), vec(cout_p)],
            out_specs=row(cout_p),
            out_shape=jax.ShapeDtypeStruct((B, L, cout_p), f32),
            compiler_params=cparams,
        )(y1, sc1, sh1, ys, scs, shs)
    else:
        out = pl.pallas_call(
            functools.partial(_finalize_identity_kernel, ratio=res_ratio),
            grid=(B,),
            in_specs=[row(cout_p), vec(cout_p), vec(cout_p), row(cin_p)],
            out_specs=row(cout_p),
            out_shape=jax.ShapeDtypeStruct((B, L, cout_p), f32),
            compiler_params=cparams,
        )(y1, sc1, sh1, xp)
    return out


def conv1d_residual_block_forward(x, params, res_ratio=0.1):
    """Single-block NCL interface (B, fin, L) -> (B, fout, L), matching the PyTorch module."""
    assert x.shape[1] == params["fin"]
    xp = _pad_last(jnp.transpose(x, (0, 2, 1)).astype(jnp.float32), params["cin_p"])
    out = conv1d_residual_block_forward_padded(xp, params, res_ratio)
    return jnp.transpose(out[:, :, :params["fout"]], (0, 2, 1))


# ----------------------------------------------------------------------------
# Pure-JAX f32 reference (PyTorch semantics) for correctness checking
# ----------------------------------------------------------------------------
def _conv1d_ref(x, w):
    pad = w.shape[-1] // 2
    return jax.lax.conv_general_dilated(
        x, w, window_strides=(1,), padding=[(pad, pad)],
        dimension_numbers=("NCH", "OIH", "NCH"))


def _bn_ref(x, g, b):
    m = jnp.mean(x, axis=(0, 2), keepdims=True)
    v = jnp.mean(jnp.square(x - m), axis=(0, 2), keepdims=True)
    return (x - m) * jax.lax.rsqrt(v + _EPS) * g[None, :, None] + b[None, :, None]


def conv1d_residual_block_ref(x, params, res_ratio=0.1):
    r = params["ref"]
    if params["learned_shortcut"]:
        xs = _bn_ref(_conv1d_ref(x, r["ws"]), r["gs"], r["bs"])
    else:
        xs = x
    dx = _conv1d_ref(x, r["w0"])
    dx = _bn_ref(dx, r["g0"], r["b0"])
    dx = jnp.where(dx > 0, dx, _SLOPE * dx)
    dx = _conv1d_ref(dx, r["w1"])
    dx = _bn_ref(dx, r["g1"], r["b1"])
    out = xs + res_ratio * dx
    return jnp.where(out > 0, out, _SLOPE * out)


# ----------------------------------------------------------------------------
# Demo
# ----------------------------------------------------------------------------
if __name__ == "__main__":
    B, L = 2, 16
    FIN, FOUT = 32, 64
    RES_RATIO = 0.1

    root = jax.random.PRNGKey(0)
    kx, kb1, kb2 = jax.random.split(root, 3)

    x = jax.random.normal(kx, (B, FIN, L), jnp.float32)
    blk1 = make_block_params(kb1, FIN, FOUT)      # learned shortcut (fin != fout)
    blk2 = make_block_params(kb2, FOUT, FOUT)     # identity shortcut (fin == fout)

    @jax.jit
    def forward(inp):
        # NCL -> padded channels-last once; chain blocks in the padded layout;
        # transpose + channel-slice only at the network boundary.
        xp = _pad_last(jnp.transpose(inp, (0, 2, 1)).astype(jnp.float32), blk1["cin_p"])
        h = conv1d_residual_block_forward_padded(xp, blk1, RES_RATIO)
        h = conv1d_residual_block_forward_padded(h, blk2, RES_RATIO)
        return jnp.transpose(h[:, :, :blk2["fout"]], (0, 2, 1))

    out = jax.block_until_ready(forward(x))

    assert out.shape == (B, FOUT, L), out.shape
    assert out.dtype == jnp.float32
    assert bool(jnp.all(jnp.isfinite(out)))

    ref = conv1d_residual_block_ref(
        conv1d_residual_block_ref(x, blk1, RES_RATIO), blk2, RES_RATIO)
    max_err = float(jnp.max(jnp.abs(out - ref)))
    assert max_err < 1e-1, f"max abs error vs f32 reference: {max_err}"

    print("KERNEL_OK")
</pallas_src>

<mosaic_0001>
module attributes {stable_mosaic.version = 11 : i64} {
  func.func @_stage1_learned_kernel(%arg0: i32, %arg1: memref<1x16x128xf32, #tpu.memory_space<vmem>>, %arg2: memref<384x128xbf16, #tpu.memory_space<vmem>>, %arg3: memref<128x128xbf16, #tpu.memory_space<vmem>>, %arg4: memref<1x16x128xbf16, #tpu.memory_space<vmem>>, %arg5: memref<1x2x128xf32, #tpu.memory_space<vmem>>, %arg6: memref<1x16x128xbf16, #tpu.memory_space<vmem>>, %arg7: memref<1x2x128xf32, #tpu.memory_space<vmem>>) attributes {dimension_semantics = [#tpu.dimension_semantics<parallel>], iteration_bounds = array<i64: 2>, scalar_prefetch = 0 : i64, scratch_operands = 0 : i64, tpu.core_type = #tpu.core_type<tc>, window_params = [{transform_indices = @transform_0, window_bounds = array<i64: 1, 16, 128>}, {pipeline_mode = #tpu.pipeline_mode<synchronous>, transform_indices = @transform_1, window_bounds = array<i64: 384, 128>}, {pipeline_mode = #tpu.pipeline_mode<synchronous>, transform_indices = @transform_2, window_bounds = array<i64: 128, 128>}, {transform_indices = @transform_3, window_bounds = array<i64: 1, 16, 128>}, {transform_indices = @transform_4, window_bounds = array<i64: 1, 2, 128>}, {transform_indices = @transform_5, window_bounds = array<i64: 1, 16, 128>}, {transform_indices = @transform_6, window_bounds = array<i64: 1, 2, 128>}]} {
    %c0 = arith.constant 0 : index
    %c0_0 = arith.constant 0 : index
    %c0_1 = arith.constant 0 : index
    %0 = vector.load %arg1[%c0, %c0_0, %c0_1] : memref<1x16x128xf32, #tpu.memory_space<vmem>>, vector<1x16x128xf32>
    %1 = vector.shape_cast %0 : vector<1x16x128xf32> to vector<16x128xf32>
    %2 = arith.truncf %1 : vector<16x128xf32> to vector<16x128xbf16>
    %cst = arith.constant 0.000000e+00 : bf16
    %3 = vector.broadcast %cst : bf16 to vector<1x128xbf16>
    %4 = vector.extract_strided_slice %2 {offsets = [0, 0], sizes = [15, 128], strides = [1, 1]} : vector<16x128xbf16> to vector<15x128xbf16>
    %5 = tpu.concatenate %3, %4 in 0 : vector<1x128xbf16>, vector<15x128xbf16> -> vector<16x128xbf16>
    %6 = vector.extract_strided_slice %2 {offsets = [1, 0], sizes = [15, 128], strides = [1, 1]} : vector<16x128xbf16> to vector<15x128xbf16>
    %7 = tpu.concatenate %6, %3 in 0 : vector<15x128xbf16>, vector<1x128xbf16> -> vector<16x128xbf16>
    %8 = tpu.concatenate %5, %2, %7 in 1 : vector<16x128xbf16>, vector<16x128xbf16>, vector<16x128xbf16> -> vector<16x384xbf16>
    %c0_2 = arith.constant 0 : index
    %c0_3 = arith.constant 0 : index
    %9 = vector.load %arg2[%c0_2, %c0_3] : memref<384x128xbf16, #tpu.memory_space<vmem>>, vector<384x128xbf16>
    %cst_4 = arith.constant dense<0.000000e+00> : vector<16x128xf32>
    %10 = tpu.matmul %8, %9, %cst_4 {dimension_numbers = #tpu.dot_dimension_numbers<[1], [0], [0], [1], [0, 0, 1, 1], [], []>} : vector<16x384xbf16>, vector<384x128xbf16>, vector<16x128xf32> -> vector<16x128xf32>
    %11 = arith.truncf %10 : vector<16x128xf32> to vector<16x128xbf16>
    %c0_5 = arith.constant 0 : index
    %c0_6 = arith.constant 0 : index
    %c0_7 = arith.constant 0 : index
    %12 = vector.load %arg4[%c0_5, %c0_6, %c0_7] : memref<1x16x128xbf16, #tpu.memory_space<vmem>>, vector<1x16x128xbf16>
    %13 = vector.shape_cast %12 : vector<1x16x128xbf16> to vector<16x128xbf16>
    %14 = vector.shape_cast %11 : vector<16x128xbf16> to vector<1x16x128xbf16>
    tpu.vector_store %arg4[%c0_5, %c0_6, %c0_7], %14 {strides = array<i32>} : memref<1x16x128xbf16, #tpu.memory_space<vmem>>, vector<1x16x128xbf16>,
    %cst_8 = arith.constant dense<0.000000e+00> : vector<128xf32>
    %15 = vector.multi_reduction <add>, %10, %cst_8 [0] : vector<16x128xf32> to vector<128xf32>
    %16 = vector.shape_cast %15 : vector<128xf32> to vector<1x128xf32>
    %17 = arith.mulf %10, %10 : vector<16x128xf32>
    %cst_9 = arith.constant dense<0.000000e+00> : vector<128xf32>
    %18 = vector.multi_reduction <add>, %17, %cst_9 [0] : vector<16x128xf32> to vector<128xf32>
    %19 = vector.shape_cast %18 : vector<128xf32> to vector<1x128xf32>
    %20 = tpu.concatenate %16, %19 in 0 : vector<1x128xf32>, vector<1x128xf32> -> vector<2x128xf32>
    %c0_10 = arith.constant 0 : index
    %c0_11 = arith.constant 0 : index
    %c0_12 = arith.constant 0 : index
    %21 = vector.load %arg5[%c0_10, %c0_11, %c0_12] : memref<1x2x128xf32, #tpu.memory_space<vmem>>, vector<1x2x128xf32>
    %22 = vector.shape_cast %21 : vector<1x2x128xf32> to vector<2x128xf32>
    %23 = vector.shape_cast %20 : vector<2x128xf32> to vector<1x2x128xf32>
    tpu.vector_store %arg5[%c0_10, %c0_11, %c0_12], %23 {strides = array<i32>} : memref<1x2x128xf32, #tpu.memory_space<vmem>>, vector<1x2x128xf32>,
    %c0_13 = arith.constant 0 : index
    %c0_14 = arith.constant 0 : index
    %24 = vector.load %arg3[%c0_13, %c0_14] : memref<128x128xbf16, #tpu.memory_space<vmem>>, vector<128x128xbf16>
    %cst_15 = arith.constant dense<0.000000e+00> : vector<16x128xf32>
    %25 = tpu.matmul %2, %24, %cst_15 {dimension_numbers = #tpu.dot_dimension_numbers<[1], [0], [0], [1], [0, 0, 1, 1], [], []>} : vector<16x128xbf16>, vector<128x128xbf16>, vector<16x128xf32> -> vector<16x128xf32>
    %26 = arith.truncf %25 : vector<16x128xf32> to vector<16x128xbf16>
    %c0_16 = arith.constant 0 : index
    %c0_17 = arith.constant 0 : index
    %c0_18 = arith.constant 0 : index
    %27 = vector.load %arg6[%c0_16, %c0_17, %c0_18] : memref<1x16x128xbf16, #tpu.memory_space<vmem>>, vector<1x16x128xbf16>
    %28 = vector.shape_cast %27 : vector<1x16x128xbf16> to vector<16x128xbf16>
    %29 = vector.shape_cast %26 : vector<16x128xbf16> to vector<1x16x128xbf16>
    tpu.vector_store %arg6[%c0_16, %c0_17, %c0_18], %29 {strides = array<i32>} : memref<1x16x128xbf16, #tpu.memory_space<vmem>>, vector<1x16x128xbf16>,
    %cst_19 = arith.constant dense<0.000000e+00> : vector<128xf32>
    %30 = vector.multi_reduction <add>, %25, %cst_19 [0] : vector<16x128xf32> to vector<128xf32>
    %31 = vector.shape_cast %30 : vector<128xf32> to vector<1x128xf32>
    %32 = arith.mulf %25, %25 : vector<16x128xf32>
    %cst_20 = arith.constant dense<0.000000e+00> : vector<128xf32>
    %33 = vector.multi_reduction <add>, %32, %cst_20 [0] : vector<16x128xf32> to vector<128xf32>
    %34 = vector.shape_cast %33 : vector<128xf32> to vector<1x128xf32>
    %35 = tpu.concatenate %31, %34 in 0 : vector<1x128xf32>, vector<1x128xf32> -> vector<2x128xf32>
    %c0_21 = arith.constant 0 : index
    %c0_22 = arith.constant 0 : index
    %c0_23 = arith.constant 0 : index
    %36 = vector.load %arg7[%c0_21, %c0_22, %c0_23] : memref<1x2x128xf32, #tpu.memory_space<vmem>>, vector<1x2x128xf32>
    %37 = vector.shape_cast %36 : vector<1x2x128xf32> to vector<2x128xf32>
    %38 = vector.shape_cast %35 : vector<2x128xf32> to vector<1x2x128xf32>
    tpu.vector_store %arg7[%c0_21, %c0_22, %c0_23], %38 {strides = array<i32>} : memref<1x2x128xf32, #tpu.memory_space<vmem>>, vector<1x2x128xf32>,
    return
  }
  func.func @transform_0(%arg0: i32) -> (i32, i32, i32) {
    %c0_i32 = arith.constant 0 : i32
    %c0_i32_0 = arith.constant 0 : i32
    %c0_i32_1 = arith.constant 0 : i32
    return %arg0, %c0_i32, %c0_i32_0 : i32, i32, i32
  }
  func.func @transform_1(%arg0: i32) -> (i32, i32) {
    %c0_i32 = arith.constant 0 : i32
    %c0_i32_0 = arith.constant 0 : i32
    %c0_i32_1 = arith.constant 0 : i32
    return %c0_i32, %c0_i32_0 : i32, i32
  }
  func.func @transform_2(%arg0: i32) -> (i32, i32) {
    %c0_i32 = arith.constant 0 : i32
    %c0_i32_0 = arith.constant 0 : i32
    %c0_i32_1 = arith.constant 0 : i32
    return %c0_i32, %c0_i32_0 : i32, i32
  }
  func.func @transform_3(%arg0: i32) -> (i32, i32, i32) {
    %c0_i32 = arith.constant 0 : i32
    %c0_i32_0 = arith.constant 0 : i32
    %c0_i32_1 = arith.constant 0 : i32
    return %arg0, %c0_i32, %c0_i32_0 : i32, i32, i32
  }
  func.func @transform_4(%arg0: i32) -> (i32, i32, i32) {
    %c0_i32 = arith.constant 0 : i32
    %c0_i32_0 = arith.constant 0 : i32
    %c0_i32_1 = arith.constant 0 : i32
    return %arg0, %c0_i32, %c0_i32_0 : i32, i32, i32
  }
  func.func @transform_5(%arg0: i32) -> (i32, i32, i32) {
    %c0_i32 = arith.constant 0 : i32
    %c0_i32_0 = arith.constant 0 : i32
    %c0_i32_1 = arith.constant 0 : i32
    return %arg0, %c0_i32, %c0_i32_0 : i32, i32, i32
  }
  func.func @transform_6(%arg0: i32) -> (i32, i32, i32) {
    %c0_i32 = arith.constant 0 : i32
    %c0_i32_0 = arith.constant 0 : i32
    %c0_i32_1 = arith.constant 0 : i32
    return %arg0, %c0_i32, %c0_i32_0 : i32, i32, i32
  }
}

module attributes {stable_mosaic.version = 11 : i64} {
  func.func @_finalize_learned_kernel(%arg0: i32, %arg1: memref<1x16x128xbf16, #tpu.memory_space<vmem>>, %arg2: memref<1x128xf32, #tpu.memory_space<vmem>>, %arg3: memref<1x128xf32, #tpu.memory_space<vmem>>, %arg4: memref<1x16x128xbf16, #tpu.memory_space<vmem>>, %arg5: memref<1x128xf32, #tpu.memory_space<vmem>>, %arg6: memref<1x128xf32, #tpu.memory_space<vmem>>, %arg7: memref<1x16x128xf32, #tpu.memory_space<vmem>>) attributes {dimension_semantics = [#tpu.dimension_semantics<parallel>], iteration_bounds = array<i64: 2>, scalar_prefetch = 0 : i64, scratch_operands = 0 : i64, tpu.core_type = #tpu.core_type<tc>, window_params = [{transform_indices = @transform_0, window_bounds = array<i64: 1, 16, 128>}, {pipeline_mode = #tpu.pipeline_mode<synchronous>, transform_indices = @transform_1, window_bounds = array<i64: 1, 128>}, {pipeline_mode = #tpu.pipeline_mode<synchronous>, transform_indices = @transform_2, window_bounds = array<i64: 1, 128>}, {transform_indices = @transform_3, window_bounds = array<i64: 1, 16, 128>}, {pipeline_mode = #tpu.pipeline_mode<synchronous>, transform_indices = @transform_4, window_bounds = array<i64: 1, 128>}, {pipeline_mode = #tpu.pipeline_mode<synchronous>, transform_indices = @transform_5, window_bounds = array<i64: 1, 128>}, {transform_indices = @transform_6, window_bounds = array<i64: 1, 16, 128>}]} {
    %c0 = arith.constant 0 : index
    %c0_0 = arith.constant 0 : index
    %c0_1 = arith.constant 0 : index
    %0 = vector.load %arg1[%c0, %c0_0, %c0_1] : memref<1x16x128xbf16, #tpu.memory_space<vmem>>, vector<1x16x128xbf16>
    %1 = vector.shape_cast %0 : vector<1x16x128xbf16> to vector<16x128xbf16>
    %2 = arith.extf %1 : vector<16x128xbf16> to vector<16x128xf32>
    %c0_2 = arith.constant 0 : index
    %c0_3 = arith.constant 0 : index
    %3 = vector.load %arg2[%c0_2, %c0_3] : memref<1x128xf32, #tpu.memory_space<vmem>>, vector<1x128xf32>
    %4 = vector.broadcast %3 : vector<1x128xf32> to vector<16x128xf32>
    %5 = arith.mulf %2, %4 : vector<16x128xf32>
    %c0_4 = arith.constant 0 : index
    %c0_5 = arith.constant 0 : index
    %6 = vector.load %arg3[%c0_4, %c0_5] : memref<1x128xf32, #tpu.memory_space<vmem>>, vector<1x128xf32>
    %7 = vector.broadcast %6 : vector<1x128xf32> to vector<16x128xf32>
    %8 = arith.addf %5, %7 : vector<16x128xf32>
    %c0_6 = arith.constant 0 : index
    %c0_7 = arith.constant 0 : index
    %c0_8 = arith.constant 0 : index
    %9 = vector.load %arg4[%c0_6, %c0_7, %c0_8] : memref<1x16x128xbf16, #tpu.memory_space<vmem>>, vector<1x16x128xbf16>
    %10 = vector.shape_cast %9 : vector<1x16x128xbf16> to vector<16x128xbf16>
    %11 = arith.extf %10 : vector<16x128xbf16> to vector<16x128xf32>
    %c0_9 = arith.constant 0 : index
    %c0_10 = arith.constant 0 : index
    %12 = vector.load %arg5[%c0_9, %c0_10] : memref<1x128xf32, #tpu.memory_space<vmem>>, vector<1x128xf32>
    %13 = vector.broadcast %12 : vector<1x128xf32> to vector<16x128xf32>
    %14 = arith.mulf %11, %13 : vector<16x128xf32>
    %c0_11 = arith.constant 0 : index
    %c0_12 = arith.constant 0 : index
    %15 = vector.load %arg6[%c0_11, %c0_12] : memref<1x128xf32, #tpu.memory_space<vmem>>, vector<1x128xf32>
    %16 = vector.broadcast %15 : vector<1x128xf32> to vector<16x128xf32>
    %17 = arith.addf %14, %16 : vector<16x128xf32>
    %cst = arith.constant 1.000000e-01 : f32
    %18 = vector.broadcast %cst : f32 to vector<16x128xf32>
    %19 = arith.mulf %18, %8 : vector<16x128xf32>
    %20 = arith.addf %17, %19 : vector<16x128xf32>
    %cst_13 = arith.constant 2.000000e-01 : f32
    %21 = vector.broadcast %cst_13 : f32 to vector<16x128xf32>
    %22 = arith.mulf %21, %20 : vector<16x128xf32>
    %23 = arith.maximumf %20, %22 : vector<16x128xf32>
    %c0_14 = arith.constant 0 : index
    %c0_15 = arith.constant 0 : index
    %c0_16 = arith.constant 0 : index
    %24 = vector.load %arg7[%c0_14, %c0_15, %c0_16] : memref<1x16x128xf32, #tpu.memory_space<vmem>>, vector<1x16x128xf32>
    %25 = vector.shape_cast %24 : vector<1x16x128xf32> to vector<16x128xf32>
    %26 = vector.shape_cast %23 : vector<16x128xf32> to vector<1x16x128xf32>
    tpu.vector_store %arg7[%c0_14, %c0_15, %c0_16], %26 {strides = array<i32>} : memref<1x16x128xf32, #tpu.memory_space<vmem>>, vector<1x16x128xf32>,
    return
  }
  func.func @transform_0(%arg0: i32) -> (i32, i32, i32) {
    %c0_i32 = arith.constant 0 : i32
    %c0_i32_0 = arith.constant 0 : i32
    %c0_i32_1 = arith.constant 0 : i32
    return %arg0, %c0_i32, %c0_i32_0 : i32, i32, i32
  }
  func.func @transform_1(%arg0: i32) -> (i32, i32) {
    %c0_i32 = arith.constant 0 : i32
    %c0_i32_0 = arith.constant 0 : i32
    %c0_i32_1 = arith.constant 0 : i32
    return %c0_i32, %c0_i32_0 : i32, i32
  }
  func.func @transform_2(%arg0: i32) -> (i32, i32) {
    %c0_i32 = arith.constant 0 : i32
    %c0_i32_0 = arith.constant 0 : i32
    %c0_i32_1 = arith.constant 0 : i32
    return %c0_i32, %c0_i32_0 : i32, i32
  }
  func.func @transform_3(%arg0: i32) -> (i32, i32, i32) {
    %c0_i32 = arith.constant 0 : i32
    %c0_i32_0 = arith.constant 0 : i32
    %c0_i32_1 = arith.constant 0 : i32
    return %arg0, %c0_i32, %c0_i32_0 : i32, i32, i32
  }
  func.func @transform_4(%arg0: i32) -> (i32, i32) {
    %c0_i32 = arith.constant 0 : i32
    %c0_i32_0 = arith.constant 0 : i32
    %c0_i32_1 = arith.constant 0 : i32
    return %c0_i32, %c0_i32_0 : i32, i32
  }
  func.func @transform_5(%arg0: i32) -> (i32, i32) {
    %c0_i32 = arith.constant 0 : i32
    %c0_i32_0 = arith.constant 0 : i32
    %c0_i32_1 = arith.constant 0 : i32
    return %c0_i32, %c0_i32_0 : i32, i32
  }
  func.func @transform_6(%arg0: i32) -> (i32, i32, i32) {
    %c0_i32 = arith.constant 0 : i32
    %c0_i32_0 = arith.constant 0 : i32
    %c0_i32_1 = arith.constant 0 : i32
    return %arg0, %c0_i32, %c0_i32_0 : i32, i32, i32
  }
}

module attributes {stable_mosaic.version = 11 : i64} {
  func.func @_stage2_kernel(%arg0: i32, %arg1: memref<1x16x128xbf16, #tpu.memory_space<vmem>>, %arg2: memref<1x128xf32, #tpu.memory_space<vmem>>, %arg3: memref<1x128xf32, #tpu.memory_space<vmem>>, %arg4: memref<384x128xbf16, #tpu.memory_space<vmem>>, %arg5: memref<1x16x128xbf16, #tpu.memory_space<vmem>>, %arg6: memref<1x2x128xf32, #tpu.memory_space<vmem>>) attributes {dimension_semantics = [#tpu.dimension_semantics<parallel>], iteration_bounds = array<i64: 2>, scalar_prefetch = 0 : i64, scratch_operands = 0 : i64, tpu.core_type = #tpu.core_type<tc>, window_params = [{transform_indices = @transform_0, window_bounds = array<i64: 1, 16, 128>}, {pipeline_mode = #tpu.pipeline_mode<synchronous>, transform_indices = @transform_1, window_bounds = array<i64: 1, 128>}, {pipeline_mode = #tpu.pipeline_mode<synchronous>, transform_indices = @transform_2, window_bounds = array<i64: 1, 128>}, {pipeline_mode = #tpu.pipeline_mode<synchronous>, transform_indices = @transform_3, window_bounds = array<i64: 384, 128>}, {transform_indices = @transform_4, window_bounds = array<i64: 1, 16, 128>}, {transform_indices = @transform_5, window_bounds = array<i64: 1, 2, 128>}]} {
    %c0 = arith.constant 0 : index
    %c0_0 = arith.constant 0 : index
    %c0_1 = arith.constant 0 : index
    %0 = vector.load %arg1[%c0, %c0_0, %c0_1] : memref<1x16x128xbf16, #tpu.memory_space<vmem>>, vector<1x16x128xbf16>
    %1 = vector.shape_cast %0 : vector<1x16x128xbf16> to vector<16x128xbf16>
    %2 = arith.extf %1 : vector<16x128xbf16> to vector<16x128xf32>
    %c0_2 = arith.constant 0 : index
    %c0_3 = arith.constant 0 : index
    %3 = vector.load %arg2[%c0_2, %c0_3] : memref<1x128xf32, #tpu.memory_space<vmem>>, vector<1x128xf32>
    %4 = vector.broadcast %3 : vector<1x128xf32> to vector<16x128xf32>
    %5 = arith.mulf %2, %4 : vector<16x128xf32>
    %c0_4 = arith.constant 0 : index
    %c0_5 = arith.constant 0 : index
    %6 = vector.load %arg3[%c0_4, %c0_5] : memref<1x128xf32, #tpu.memory_space<vmem>>, vector<1x128xf32>
    %7 = vector.broadcast %6 : vector<1x128xf32> to vector<16x128xf32>
    %8 = arith.addf %5, %7 : vector<16x128xf32>
    %cst = arith.constant 2.000000e-01 : f32
    %9 = vector.broadcast %cst : f32 to vector<16x128xf32>
    %10 = arith.mulf %9, %8 : vector<16x128xf32>
    %11 = arith.maximumf %8, %10 : vector<16x128xf32>
    %12 = arith.truncf %11 : vector<16x128xf32> to vector<16x128xbf16>
    %cst_6 = arith.constant 0.000000e+00 : bf16
    %13 = vector.broadcast %cst_6 : bf16 to vector<1x128xbf16>
    %14 = vector.extract_strided_slice %12 {offsets = [0, 0], sizes = [15, 128], strides = [1, 1]} : vector<16x128xbf16> to vector<15x128xbf16>
    %15 = tpu.concatenate %13, %14 in 0 : vector<1x128xbf16>, vector<15x128xbf16> -> vector<16x128xbf16>
    %16 = vector.extract_strided_slice %12 {offsets = [1, 0], sizes = [15, 128], strides = [1, 1]} : vector<16x128xbf16> to vector<15x128xbf16>
    %17 = tpu.concatenate %16, %13 in 0 : vector<15x128xbf16>, vector<1x128xbf16> -> vector<16x128xbf16>
    %18 = tpu.concatenate %15, %12, %17 in 1 : vector<16x128xbf16>, vector<16x128xbf16>, vector<16x128xbf16> -> vector<16x384xbf16>
    %c0_7 = arith.constant 0 : index
    %c0_8 = arith.constant 0 : index
    %19 = vector.load %arg4[%c0_7, %c0_8] : memref<384x128xbf16, #tpu.memory_space<vmem>>, vector<384x128xbf16>
    %cst_9 = arith.constant dense<0.000000e+00> : vector<16x128xf32>
    %20 = tpu.matmul %18, %19, %cst_9 {dimension_numbers = #tpu.dot_dimension_numbers<[1], [0], [0], [1], [0, 0, 1, 1], [], []>} : vector<16x384xbf16>, vector<384x128xbf16>, vector<16x128xf32> -> vector<16x128xf32>
    %21 = arith.truncf %20 : vector<16x128xf32> to vector<16x128xbf16>
    %c0_10 = arith.constant 0 : index
    %c0_11 = arith.constant 0 : index
    %c0_12 = arith.constant 0 : index
    %22 = vector.load %arg5[%c0_10, %c0_11, %c0_12] : memref<1x16x128xbf16, #tpu.memory_space<vmem>>, vector<1x16x128xbf16>
    %23 = vector.shape_cast %22 : vector<1x16x128xbf16> to vector<16x128xbf16>
    %24 = vector.shape_cast %21 : vector<16x128xbf16> to vector<1x16x128xbf16>
    tpu.vector_store %arg5[%c0_10, %c0_11, %c0_12], %24 {strides = array<i32>} : memref<1x16x128xbf16, #tpu.memory_space<vmem>>, vector<1x16x128xbf16>,
    %cst_13 = arith.constant dense<0.000000e+00> : vector<128xf32>
    %25 = vector.multi_reduction <add>, %20, %cst_13 [0] : vector<16x128xf32> to vector<128xf32>
    %26 = vector.shape_cast %25 : vector<128xf32> to vector<1x128xf32>
    %27 = arith.mulf %20, %20 : vector<16x128xf32>
    %cst_14 = arith.constant dense<0.000000e+00> : vector<128xf32>
    %28 = vector.multi_reduction <add>, %27, %cst_14 [0] : vector<16x128xf32> to vector<128xf32>
    %29 = vector.shape_cast %28 : vector<128xf32> to vector<1x128xf32>
    %30 = tpu.concatenate %26, %29 in 0 : vector<1x128xf32>, vector<1x128xf32> -> vector<2x128xf32>
    %c0_15 = arith.constant 0 : index
    %c0_16 = arith.constant 0 : index
    %c0_17 = arith.constant 0 : index
    %31 = vector.load %arg6[%c0_15, %c0_16, %c0_17] : memref<1x2x128xf32, #tpu.memory_space<vmem>>, vector<1x2x128xf32>
    %32 = vector.shape_cast %31 : vector<1x2x128xf32> to vector<2x128xf32>
    %33 = vector.shape_cast %30 : vector<2x128xf32> to vector<1x2x128xf32>
    tpu.vector_store %arg6[%c0_15, %c0_16, %c0_17], %33 {strides = array<i32>} : memref<1x2x128xf32, #tpu.memory_space<vmem>>, vector<1x2x128xf32>,
    return
  }
  func.func @transform_0(%arg0: i32) -> (i32, i32, i32) {
    %c0_i32 = arith.constant 0 : i32
    %c0_i32_0 = arith.constant 0 : i32
    %c0_i32_1 = arith.constant 0 : i32
    return %arg0, %c0_i32, %c0_i32_0 : i32, i32, i32
  }
  func.func @transform_1(%arg0: i32) -> (i32, i32) {
    %c0_i32 = arith.constant 0 : i32
    %c0_i32_0 = arith.constant 0 : i32
    %c0_i32_1 = arith.constant 0 : i32
    return %c0_i32, %c0_i32_0 : i32, i32
  }
  func.func @transform_2(%arg0: i32) -> (i32, i32) {
    %c0_i32 = arith.constant 0 : i32
    %c0_i32_0 = arith.constant 0 : i32
    %c0_i32_1 = arith.constant 0 : i32
    return %c0_i32, %c0_i32_0 : i32, i32
  }
  func.func @transform_3(%arg0: i32) -> (i32, i32) {
    %c0_i32 = arith.constant 0 : i32
    %c0_i32_0 = arith.constant 0 : i32
    %c0_i32_1 = arith.constant 0 : i32
    return %c0_i32, %c0_i32_0 : i32, i32
  }
  func.func @transform_4(%arg0: i32) -> (i32, i32, i32) {
    %c0_i32 = arith.constant 0 : i32
    %c0_i32_0 = arith.constant 0 : i32
    %c0_i32_1 = arith.constant 0 : i32
    return %arg0, %c0_i32, %c0_i32_0 : i32, i32, i32
  }
  func.func @transform_5(%arg0: i32) -> (i32, i32, i32) {
    %c0_i32 = arith.constant 0 : i32
    %c0_i32_0 = arith.constant 0 : i32
    %c0_i32_1 = arith.constant 0 : i32
    return %arg0, %c0_i32, %c0_i32_0 : i32, i32, i32
  }
}

module attributes {stable_mosaic.version = 11 : i64} {
  func.func @_stage1_identity_kernel(%arg0: i32, %arg1: memref<1x16x128xf32, #tpu.memory_space<vmem>>, %arg2: memref<384x128xbf16, #tpu.memory_space<vmem>>, %arg3: memref<1x16x128xbf16, #tpu.memory_space<vmem>>, %arg4: memref<1x2x128xf32, #tpu.memory_space<vmem>>) attributes {dimension_semantics = [#tpu.dimension_semantics<parallel>], iteration_bounds = array<i64: 2>, scalar_prefetch = 0 : i64, scratch_operands = 0 : i64, tpu.core_type = #tpu.core_type<tc>, window_params = [{transform_indices = @transform_0, window_bounds = array<i64: 1, 16, 128>}, {pipeline_mode = #tpu.pipeline_mode<synchronous>, transform_indices = @transform_1, window_bounds = array<i64: 384, 128>}, {transform_indices = @transform_2, window_bounds = array<i64: 1, 16, 128>}, {transform_indices = @transform_3, window_bounds = array<i64: 1, 2, 128>}]} {
    %c0 = arith.constant 0 : index
    %c0_0 = arith.constant 0 : index
    %c0_1 = arith.constant 0 : index
    %0 = vector.load %arg1[%c0, %c0_0, %c0_1] : memref<1x16x128xf32, #tpu.memory_space<vmem>>, vector<1x16x128xf32>
    %1 = vector.shape_cast %0 : vector<1x16x128xf32> to vector<16x128xf32>
    %2 = arith.truncf %1 : vector<16x128xf32> to vector<16x128xbf16>
    %cst = arith.constant 0.000000e+00 : bf16
    %3 = vector.broadcast %cst : bf16 to vector<1x128xbf16>
    %4 = vector.extract_strided_slice %2 {offsets = [0, 0], sizes = [15, 128], strides = [1, 1]} : vector<16x128xbf16> to vector<15x128xbf16>
    %5 = tpu.concatenate %3, %4 in 0 : vector<1x128xbf16>, vector<15x128xbf16> -> vector<16x128xbf16>
    %6 = vector.extract_strided_slice %2 {offsets = [1, 0], sizes = [15, 128], strides = [1, 1]} : vector<16x128xbf16> to vector<15x128xbf16>
    %7 = tpu.concatenate %6, %3 in 0 : vector<15x128xbf16>, vector<1x128xbf16> -> vector<16x128xbf16>
    %8 = tpu.concatenate %5, %2, %7 in 1 : vector<16x128xbf16>, vector<16x128xbf16>, vector<16x128xbf16> -> vector<16x384xbf16>
    %c0_2 = arith.constant 0 : index
    %c0_3 = arith.constant 0 : index
    %9 = vector.load %arg2[%c0_2, %c0_3] : memref<384x128xbf16, #tpu.memory_space<vmem>>, vector<384x128xbf16>
    %cst_4 = arith.constant dense<0.000000e+00> : vector<16x128xf32>
    %10 = tpu.matmul %8, %9, %cst_4 {dimension_numbers = #tpu.dot_dimension_numbers<[1], [0], [0], [1], [0, 0, 1, 1], [], []>} : vector<16x384xbf16>, vector<384x128xbf16>, vector<16x128xf32> -> vector<16x128xf32>
    %11 = arith.truncf %10 : vector<16x128xf32> to vector<16x128xbf16>
    %c0_5 = arith.constant 0 : index
    %c0_6 = arith.constant 0 : index
    %c0_7 = arith.constant 0 : index
    %12 = vector.load %arg3[%c0_5, %c0_6, %c0_7] : memref<1x16x128xbf16, #tpu.memory_space<vmem>>, vector<1x16x128xbf16>
    %13 = vector.shape_cast %12 : vector<1x16x128xbf16> to vector<16x128xbf16>
    %14 = vector.shape_cast %11 : vector<16x128xbf16> to vector<1x16x128xbf16>
    tpu.vector_store %arg3[%c0_5, %c0_6, %c0_7], %14 {strides = array<i32>} : memref<1x16x128xbf16, #tpu.memory_space<vmem>>, vector<1x16x128xbf16>,
    %cst_8 = arith.constant dense<0.000000e+00> : vector<128xf32>
    %15 = vector.multi_reduction <add>, %10, %cst_8 [0] : vector<16x128xf32> to vector<128xf32>
    %16 = vector.shape_cast %15 : vector<128xf32> to vector<1x128xf32>
    %17 = arith.mulf %10, %10 : vector<16x128xf32>
    %cst_9 = arith.constant dense<0.000000e+00> : vector<128xf32>
    %18 = vector.multi_reduction <add>, %17, %cst_9 [0] : vector<16x128xf32> to vector<128xf32>
    %19 = vector.shape_cast %18 : vector<128xf32> to vector<1x128xf32>
    %20 = tpu.concatenate %16, %19 in 0 : vector<1x128xf32>, vector<1x128xf32> -> vector<2x128xf32>
    %c0_10 = arith.constant 0 : index
    %c0_11 = arith.constant 0 : index
    %c0_12 = arith.constant 0 : index
    %21 = vector.load %arg4[%c0_10, %c0_11, %c0_12] : memref<1x2x128xf32, #tpu.memory_space<vmem>>, vector<1x2x128xf32>
    %22 = vector.shape_cast %21 : vector<1x2x128xf32> to vector<2x128xf32>
    %23 = vector.shape_cast %20 : vector<2x128xf32> to vector<1x2x128xf32>
    tpu.vector_store %arg4[%c0_10, %c0_11, %c0_12], %23 {strides = array<i32>} : memref<1x2x128xf32, #tpu.memory_space<vmem>>, vector<1x2x128xf32>,
    return
  }
  func.func @transform_0(%arg0: i32) -> (i32, i32, i32) {
    %c0_i32 = arith.constant 0 : i32
    %c0_i32_0 = arith.constant 0 : i32
    %c0_i32_1 = arith.constant 0 : i32
    return %arg0, %c0_i32, %c0_i32_0 : i32, i32, i32
  }
  func.func @transform_1(%arg0: i32) -> (i32, i32) {
    %c0_i32 = arith.constant 0 : i32
    %c0_i32_0 = arith.constant 0 : i32
    %c0_i32_1 = arith.constant 0 : i32
    return %c0_i32, %c0_i32_0 : i32, i32
  }
  func.func @transform_2(%arg0: i32) -> (i32, i32, i32) {
    %c0_i32 = arith.constant 0 : i32
    %c0_i32_0 = arith.constant 0 : i32
    %c0_i32_1 = arith.constant 0 : i32
    return %arg0, %c0_i32, %c0_i32_0 : i32, i32, i32
  }
  func.func @transform_3(%arg0: i32) -> (i32, i32, i32) {
    %c0_i32 = arith.constant 0 : i32
    %c0_i32_0 = arith.constant 0 : i32
    %c0_i32_1 = arith.constant 0 : i32
    return %arg0, %c0_i32, %c0_i32_0 : i32, i32, i32
  }
}

module attributes {stable_mosaic.version = 11 : i64} {
  func.func @_finalize_identity_kernel(%arg0: i32, %arg1: memref<1x16x128xbf16, #tpu.memory_space<vmem>>, %arg2: memref<1x128xf32, #tpu.memory_space<vmem>>, %arg3: memref<1x128xf32, #tpu.memory_space<vmem>>, %arg4: memref<1x16x128xf32, #tpu.memory_space<vmem>>, %arg5: memref<1x16x128xf32, #tpu.memory_space<vmem>>) attributes {dimension_semantics = [#tpu.dimension_semantics<parallel>], iteration_bounds = array<i64: 2>, scalar_prefetch = 0 : i64, scratch_operands = 0 : i64, tpu.core_type = #tpu.core_type<tc>, window_params = [{transform_indices = @transform_0, window_bounds = array<i64: 1, 16, 128>}, {pipeline_mode = #tpu.pipeline_mode<synchronous>, transform_indices = @transform_1, window_bounds = array<i64: 1, 128>}, {pipeline_mode = #tpu.pipeline_mode<synchronous>, transform_indices = @transform_2, window_bounds = array<i64: 1, 128>}, {transform_indices = @transform_3, window_bounds = array<i64: 1, 16, 128>}, {transform_indices = @transform_4, window_bounds = array<i64: 1, 16, 128>}]} {
    %c0 = arith.constant 0 : index
    %c0_0 = arith.constant 0 : index
    %c0_1 = arith.constant 0 : index
    %0 = vector.load %arg1[%c0, %c0_0, %c0_1] : memref<1x16x128xbf16, #tpu.memory_space<vmem>>, vector<1x16x128xbf16>
    %1 = vector.shape_cast %0 : vector<1x16x128xbf16> to vector<16x128xbf16>
    %2 = arith.extf %1 : vector<16x128xbf16> to vector<16x128xf32>
    %c0_2 = arith.constant 0 : index
    %c0_3 = arith.constant 0 : index
    %3 = vector.load %arg2[%c0_2, %c0_3] : memref<1x128xf32, #tpu.memory_space<vmem>>, vector<1x128xf32>
    %4 = vector.broadcast %3 : vector<1x128xf32> to vector<16x128xf32>
    %5 = arith.mulf %2, %4 : vector<16x128xf32>
    %c0_4 = arith.constant 0 : index
    %c0_5 = arith.constant 0 : index
    %6 = vector.load %arg3[%c0_4, %c0_5] : memref<1x128xf32, #tpu.memory_space<vmem>>, vector<1x128xf32>
    %7 = vector.broadcast %6 : vector<1x128xf32> to vector<16x128xf32>
    %8 = arith.addf %5, %7 : vector<16x128xf32>
    %c0_6 = arith.constant 0 : index
    %c0_7 = arith.constant 0 : index
    %c0_8 = arith.constant 0 : index
    %9 = vector.load %arg4[%c0_6, %c0_7, %c0_8] : memref<1x16x128xf32, #tpu.memory_space<vmem>>, vector<1x16x128xf32>
    %10 = vector.shape_cast %9 : vector<1x16x128xf32> to vector<16x128xf32>
    %cst = arith.constant 1.000000e-01 : f32
    %11 = vector.broadcast %cst : f32 to vector<16x128xf32>
    %12 = arith.mulf %11, %8 : vector<16x128xf32>
    %13 = arith.addf %10, %12 : vector<16x128xf32>
    %cst_9 = arith.constant 2.000000e-01 : f32
    %14 = vector.broadcast %cst_9 : f32 to vector<16x128xf32>
    %15 = arith.mulf %14, %13 : vector<16x128xf32>
    %16 = arith.maximumf %13, %15 : vector<16x128xf32>
    %c0_10 = arith.constant 0 : index
    %c0_11 = arith.constant 0 : index
    %c0_12 = arith.constant 0 : index
    %17 = vector.load %arg5[%c0_10, %c0_11, %c0_12] : memref<1x16x128xf32, #tpu.memory_space<vmem>>, vector<1x16x128xf32>
    %18 = vector.shape_cast %17 : vector<1x16x128xf32> to vector<16x128xf32>
    %19 = vector.shape_cast %16 : vector<16x128xf32> to vector<1x16x128xf32>
    tpu.vector_store %arg5[%c0_10, %c0_11, %c0_12], %19 {strides = array<i32>} : memref<1x16x128xf32, #tpu.memory_space<vmem>>, vector<1x16x128xf32>,
    return
  }
  func.func @transform_0(%arg0: i32) -> (i32, i32, i32) {
    %c0_i32 = arith.constant 0 : i32
    %c0_i32_0 = arith.constant 0 : i32
    %c0_i32_1 = arith.constant 0 : i32
    return %arg0, %c0_i32, %c0_i32_0 : i32, i32, i32
  }
  func.func @transform_1(%arg0: i32) -> (i32, i32) {
    %c0_i32 = arith.constant 0 : i32
    %c0_i32_0 = arith.constant 0 : i32
    %c0_i32_1 = arith.constant 0 : i32
    return %c0_i32, %c0_i32_0 : i32, i32
  }
  func.func @transform_2(%arg0: i32) -> (i32, i32) {
    %c0_i32 = arith.constant 0 : i32
    %c0_i32_0 = arith.constant 0 : i32
    %c0_i32_1 = arith.constant 0 : i32
    return %c0_i32, %c0_i32_0 : i32, i32
  }
  func.func @transform_3(%arg0: i32) -> (i32, i32, i32) {
    %c0_i32 = arith.constant 0 : i32
    %c0_i32_0 = arith.constant 0 : i32
    %c0_i32_1 = arith.constant 0 : i32
    return %arg0, %c0_i32, %c0_i32_0 : i32, i32, i32
  }
  func.func @transform_4(%arg0: i32) -> (i32, i32, i32) {
    %c0_i32 = arith.constant 0 : i32
    %c0_i32_0 = arith.constant 0 : i32
    %c0_i32_1 = arith.constant 0 : i32
    return %arg0, %c0_i32, %c0_i32_0 : i32, i32, i32
  }
}

</mosaic_0001>

<bundles_post_ra>
// kernel: forward.8
= control target key start
LH: loop header
LB: loop body
LE: loop exit
PB: predicated region body
PF: predicated region fallthrough
CT: control target
= control target key end

     0   :  { %s472_s21 = smov 0   ;;  %s508_s0 = inlined_call_operand.vmem [shape: bf16[2,16,128], index: 0, kind: input, shape index: {}]   ;;  %s509_s1 = inlined_call_operand.vmem [shape: f32[1,128], index: 1, kind: input, shape index: {}]   ;;  %s510_s2 = inlined_call_operand.vmem [shape: f32[1,128], index: 2, kind: input, shape index: {}]   ;;  %s511_s3 = inlined_call_operand.vmem [shape: bf16[2,16,128], index: 3, kind: input, shape index: {}]   ;;  %s512_s4 = inlined_call_operand.vmem [shape: f32[1,128], index: 4, kind: input, shape index: {}]   ;;  %s513_s5 = inlined_call_operand.vmem [shape: f32[1,128], index: 5, kind: input, shape index: {}]   ;;  %s514_s6 = inlined_call_operand.vmem [shape: f32[2,16,128], index: 6, kind: output, shape index: {}]  }
   0x1 LB: > { %s393_s22 = sadd.s32 4294967295, %s435_s21   ;;  %p397_p0 = scmp.ge.s32.totalorder %s435_s21, 1  ;;  %s435_s21 = sphi %s472_s21, %s16_s21  }
   0x2   : > { %p222_p1 = scmp.lt.s32.totalorder %s435_s21, 3 }
   0x4   : > { %p223_p2 = pnand %p397_p0, %p222_p1 }
   0x5   : > { %p257_p3 = scmp.lt.s32.totalorder (!%p223_p2), %s393_s22, 1  ;;  %v404_v0 = vld [vmem:[%s509_s1] ss:$0 sm:$0xff] (!%p223_p2) }
   0x6   : > { %226 = sbr.rel (%p223_p2) target bundleno = 32 (0x20), region = 44  ;;  %v406_v3 = vld [vmem:[%s512_s4] ss:$0 sm:$0xff] (!%p223_p2) }
   0x7   : > { %v405_v8 = vld [vmem:[%s510_s2] ss:$0 sm:$0xff] (!%p223_p2) }
   0x8   : > { %v407_v9 = vld [vmem:[%s513_s5] ss:$0 sm:$0xff] (!%p223_p2) }
   0xd   : > { %s516_s22 = smov (!%p257_p3, %s393_s22), 1 }
   0xe   : > { %s410_s23 = sshll.u32 %s516_s22, 3  ;;  %s412_s14 = sshll.u32 %s516_s22, 4 }
   0xf   : > { %s261_s26 = scalar_lea.vmem %s508_s0, %s410_s23  ;;  %s266_s29 = scalar_lea.vmem %s511_s3, %s410_s23 }
  0x10   : > { %v414_v1 = vld [vmem:[%s261_s26] sm:$0xff]   ;;  %s271_s17 = scalar_lea.vmem %s514_s6, %s412_s14 }
  0x11   : > { %v418_v2 = vld [vmem:[%s266_s29] sm:$0xff]   ;;  %v415_v4 = vunpack.c.l.bf16 %v414_v1  ;;  %v416_v5 = vunpack.c.h.bf16 %v414_v1 }
  0x12   : > { %v419_v6 = vunpack.c.l.bf16 %v418_v2  ;;  %v420_v7 = vunpack.c.h.bf16 %v418_v2 }
  0x13   : > { %v283_v10 = vmul.f32 %v415_v4, %v404_v0  ;;  %v284_v12 = vmul.f32 %v416_v5, %v404_v0 }
  0x14   : > { %v305_v11 = vmul.f32 %v419_v6, %v406_v3  ;;  %v306_v13 = vmul.f32 %v420_v7, %v406_v3 }
  0x15   : > { %v292_v14 = vadd.f32 %v405_v8, %v283_v10  ;;  %v293_v16 = vadd.f32 %v405_v8, %v284_v12 }
  0x16   : > { %v314_v15 = vadd.f32 %v407_v9, %v305_v11  ;;  %v315_v17 = vadd.f32 %v407_v9, %v306_v13 }
  0x17   : > { %v316_v18 = vmul.f32 0.1, %v292_v14  ;;  %v317_v19 = vmul.f32 0.1, %v293_v16 }
  0x19   : > { %v318_v20 = vadd.f32 %v316_v18, %v314_v15  ;;  %v319_v21 = vadd.f32 %v317_v19, %v315_v17 }
  0x1b   : > { %v320_v22 = vmul.f32 0.2, %v318_v20  ;;  %v321_v23 = vmul.f32 0.2, %v319_v21 }
  0x1d   : > { %v322_v24 = vmax.f32 %v318_v20, %v320_v22  ;;  %v323_v25 = vmax.f32 %v319_v21, %v321_v23 }
  0x1f   : > { %324 = vst [vmem:[%s271_s17] sm:$0xff] %v322_v24  ;;  %325 = vst [vmem:[%s271_s17 + $0x8] sm:$0xff] %v323_v25 }
  0x20 PF: > { %s16_s21 = sadd.s32 1, %s435_s21  }
  0x21   : > { %p13_p4 = scmp.ge.s32.totalorder %s16_s21, 4  }
  0x23   :  { %15 = sbr.rel (!%p13_p4) target bundleno = 1 (0x1), region = 77 }

// kernel: forward.6
= control target key start
LH: loop header
LB: loop body
LE: loop exit
PB: predicated region body
PF: predicated region fallthrough
CT: control target
= control target key end

     0   :  { %12 = vsyncpa [#allocation3], 0  ;;  %s1206_s21 = smov 0   ;;  %s1329_s0 = inlined_call_operand.vmem [shape: f32[2,16,128], index: 0, kind: input, shape index: {}]   ;;  %s1330_s1 = inlined_call_operand.hbm [shape: bf16[384,128], index: 1, kind: input, shape index: {}]   ;;  %s1331_s2 = inlined_call_operand.vmem [shape: bf16[128,128], index: 2, kind: input, shape index: {}]   ;;  %s1332_s3 = inlined_call_operand.vmem [shape: bf16[2,16,128], index: 3, kind: output, shape index: {0}]   ;;  %s1333_s4 = inlined_call_operand.vmem [shape: f32[2,2,128], index: 4, kind: output, shape index: {1}]   ;;  %s1334_s5 = inlined_call_operand.vmem [shape: bf16[2,16,128], index: 5, kind: output, shape index: {2}]   ;;  %s1335_s6 = inlined_call_operand.vmem [shape: f32[2,2,128], index: 6, kind: output, shape index: {3}]  }
   0x1 LB: > { %s1212_s22 = sadd.s32 4294967295, %s1164_s21   ;;  %p923_p0 = scmp.ge.s32.totalorder %s1164_s21, 1  ;;  %s1164_s21 = sphi %s1206_s21, %s18_s21  }
   0x2   : > { %p195_p1 = scmp.lt.s32.totalorder %s1164_s21, 3  ;;  %s1166_s23 = smov [#allocation2]  }
   0x3   : > { %s207_s24 = sshll.u32 %s1166_s23, 4  ;;  %p1336_p3 = scmp.eq.s32.totalorder %s1212_s22, 0  ;;  %s208_s24 = int_to_ptr.vmem [resolvable:$true] %s207_s24 }
   0x4   : > { %p1216_p2 = pnand %p923_p0, %p195_p1  ;;  %s1126_s29 = scalar_lea.hbm %s1330_s1, 3072 }
   0x5   : > { %p1127_p6 = scmp.ne.s32.totalorder %s1330_s1, %s1126_s29  ;;  %p1133_p10 = scmp.lt.u32.totalorder %s1126_s29, %s1330_s1 }
   0x6   : > { %s1338_s25 = scalar_select %p1216_p2, 1, 0 }
   0x7   : > { %p1075_p4 = pneg %p1216_p2 }
   0x9   : > { %p1225_p5 = pnand %p1336_p3, %p1075_p4 }
   0xb   : > { %p1128_p7 = pneg %p1225_p5 }
   0xd   : > { %p1129_p8 = pnand %p1128_p7, %p1127_p6 }
   0xf   : > { %p1130_p9 = pneg %p1129_p8 }
  0x11   : > { %p1135_p11 = pnand %p1133_p10, %p1130_p9 }
  0x13   : > { %1138 = shalt.err (!%p1135_p11)
}
  0x14   : > { %s1139_s10 = scalar_lea.vmem %s208_s24, 3072  ;;  %p1147_p1 = scmp.lt.s32.totalorder %s208_s24, %s208_s24 }
  0x15   : > { %p1140_p12 = scmp.ne.s32.totalorder %s208_s24, %s1139_s10  ;;  %p1148_p4 = scmp.lt.s32.totalorder %s1139_s10, %s1139_s10 }
  0x17   : > { %p1142_p13 = pnand %p1140_p12, %p1128_p7  ;;  %p1149_p3 = por %p1148_p4, %p1147_p1 }
  0x19   : > { %p1143_p0 = pneg %p1142_p13 }
  0x1b   : > { %p1150_p2 = pnand %p1149_p3, %p1143_p0 }
  0x1d   : > { %1153 = shalt.err (!%p1150_p2)
}
  0x1e   : > { %s1167_s11 = smov 64   ;;  %s1168_s12 = smov 4  }
  0x1f   : > { %1078 = dma.hbm_to_vmem [thread:$0]  (!%p1225_p5), %s1330_s1, 3072, %s208_s24, [#allocation3], %s1167_s11, %s1167_s11, %s1168_s12  }
  0x20   : > { %p1340_p6 = scmp.ne.s32.totalorder %s1338_s25, 0 }
  0x21   : > { %p1341_p8 = scmp.eq.s32.totalorder (!%p1340_p6), %s1212_s22, 0 }
  0x22   : > { %234 = sbr.rel (%p1340_p6) target bundleno = 340 (0x154), region = 32 }
  0x29   : > { %1159 = dma.done.wait (%p1341_p8), [#allocation3], 3072   ;;  %p1342_p7 = pmov %p1341_p8 }
  0x2a   : > { %v1169_v0 = vmov 0.0   ;;  %vm1170_vm0 = vmmov 0   ;;  %v1094_v1 = vld [vmem:[#allocation2 + $0x40] sm:$0xff]   ;;  %v1096_v3 = vld [vmem:[#allocation2 + $0x48] sm:$0xff]   ;;  %v1099_v6 = vld [vmem:[#allocation2 + $0x50] sm:$0xff]   ;;  %p277_p2 = scmp.lt.s32.totalorder %s1212_s22, 1 }
  0x2b   : > { %1161 = vsyncadd (%p1342_p7), [#allocation3], 4294964224  ;;  %1031 = vmatprep.subr.bf16.mxu1 %v1169_v0  ;;  %1047 = vmatprep.mubr.msk.bf16.mxu1 %vm1170_vm0, %v1169_v0  ;;  %v1095_v2 = vld [vmem:[#allocation2] sm:$0xff]   ;;  %v1098_v5 = vld [vmem:[#allocation2 + $0x8] sm:$0xff]   ;;  %vm313_vm1 = vsmask.f32 256 }
  0x2c   : > { %991 = vmatprep.subr.bf16.mxu0 %v1094_v1  ;;  %v1097_v4 = vld [vmem:[#allocation2 + $0x80] sm:$0xff]   ;;  %v1100_v7 = vld [vmem:[#allocation2 + $0x88] sm:$0xff]   ;;  %v1101_v8 = vld [vmem:[#allocation2 + $0x10] sm:$0xff]   ;;  %s1344_s22 = smov (!%p277_p2, %s1212_s22), 1  ;;  %vm320_vm2 = vsmask.f32 7424 }
  0x2d   : > { %992 = vmatpush3.bf16.msra.mxu0 %v1095_v2  ;;  %1032 = vmatpush3.bf16.msra.mxu1 %v1097_v4  ;;  %v1102_v9 = vld [vmem:[#allocation2 + $0x58] sm:$0xff]   ;;  %v1103_v10 = vld [vmem:[#allocation2 + $0x90] sm:$0xff]   ;;  %v1105_v12 = vld [vmem:[#allocation2 + $0x60] sm:$0xff]   ;;  %s974_s15 = sshll.u32 %s1344_s22, 4  ;;  %vm312_vm3 = vcmask 1040384   ;;  %vm319_vm4 = vcmask 1047552  }
  0x2e   : > { %993 = vmatprep.subr.bf16.mxu0 %v1096_v3  ;;  %1033 = vmatprep.subr.bf16.mxu1 %v1169_v0  ;;  %v1104_v11 = vld [vmem:[#allocation2 + $0x18] sm:$0xff]   ;;  %v1107_v14 = vld [vmem:[#allocation2 + $0x20] sm:$0xff]   ;;  %v1108_v15 = vld [vmem:[#allocation2 + $0x68] sm:$0xff]   ;;  %s281_s18 = scalar_lea.vmem %s1329_s0, %s974_s15  ;;  %s975_s13 = sshll.u32 %s1344_s22, 3 }
  0x2f   : > { %v1106_v13 = vld [vmem:[#allocation2 + $0x98] sm:$0xff]   ;;  %v1109_v16 = vld [vmem:[#allocation2 + $0xa0] sm:$0xff]   ;;  %v1110_v17 = vld [vmem:[#allocation2 + $0x28] sm:$0xff]   ;;  %s286_s16 = scalar_lea.vmem %s1332_s3, %s975_s13  ;;  %s932_s17 = sshll.u32 %s1344_s22, 1 }
  0x30   : > { %v1111_v18 = vld [vmem:[#allocation2 + $0x70] sm:$0xff]   ;;  %v1112_v19 = vld [vmem:[#allocation2 + $0xa8] sm:$0xff]   ;;  %v301_v21 = vld [vmem:[%s281_s18] sm:$0xff]  ;;  %s290_s20 = scalar_lea.vmem %s1333_s4, %s932_s17  ;;  %s295_s25 = scalar_lea.vmem %s1334_s5, %s975_s13 }
  0x31   : > { %994 = vmatpush3.bf16.msra.mxu0 %v1098_v5  ;;  %1034 = vmatpush3.bf16.msra.mxu1 %v1100_v7  ;;  %v1113_v20 = vld [vmem:[#allocation2 + $0x30] sm:$0xff]   ;;  %v302_v22 = vld [vmem:[%s281_s18 + $0x8] sm:$0xff]  ;;  %v1114_v23 = vld [vmem:[#allocation2 + $0x78] sm:$0xff]   ;;  %s299_s27 = scalar_lea.vmem %s1335_s6, %s932_s17 }
  0x32   : > { %995 = vmatprep.subr.bf16.mxu0 %v1099_v6  ;;  %1035 = vmatprep.subr.bf16.mxu1 %v1169_v0  ;;  %v303_v24 = vpack.c.bf16 %v302_v22, %v301_v21  ;;  %v1115_v25 = vld [vmem:[#allocation2 + $0xb0] sm:$0xff]   ;;  %v1116_v26 = vld [vmem:[#allocation2 + $0x38] sm:$0xff]   ;;  %vm314_vm5 = vmand %vm312_vm3, %vm313_vm1 }
  0x33   : > { %v1117_v30 = vld [vmem:[#allocation2 + $0xb8] sm:$0xff]   ;;  %vm321_vm6 = vmand %vm319_vm4, %vm320_vm2  ;;  %v1118_v34 = vld [vmem:[%s1331_s2] sm:$0xff]  }
  0x34   : > { %547 = vmatprep.mubr.bf16.mxu0 %v303_v24  ;;  %v305_v27 = vshrl.u32 %v303_v24, 16  ;;  %v308_v28 = vshll.u32 %v303_v24, 16  ;;  %v1119_v37 = vld [vmem:[%s1331_s2 + $0x8] sm:$0xff]   ;;  %v1120_v38 = vld [vmem:[%s1331_s2 + $0x10] sm:$0xff]   ;;  %v1121_v39 = vld [vmem:[%s1331_s2 + $0x18] sm:$0xff]  }
  0x35   : > { %996 = vmatpush3.bf16.msra.mxu0 %v1101_v8  ;;  %1036 = vmatpush3.bf16.msra.mxu1 %v1103_v10  ;;  %v1122_v40 = vld [vmem:[%s1331_s2 + $0x20] sm:$0xff]   ;;  %v1123_v41 = vld [vmem:[%s1331_s2 + $0x28] sm:$0xff]   ;;  %v1124_v42 = vld [vmem:[%s1331_s2 + $0x30] sm:$0xff]  }
  0x36   : > { %997 = vmatprep.subr.bf16.mxu0 %v1102_v9  ;;  %1037 = vmatprep.subr.bf16.mxu1 %v1169_v0  ;;  %v307_v29 = vrot.slane %v305_v27, 7  ;;  %v316_v31 = vrot.slane %v308_v28, 1  ;;  %v1125_v43 = vld [vmem:[%s1331_s2 + $0x38] sm:$0xff]  }
  0x38   : > { %v310_v32 = vor.u32 %v308_v28, %v307_v29  ;;  %v317_v33 = vor.u32 %v316_v31, %v305_v27 }
  0x39   : > { %998 = vmatpush3.bf16.msra.mxu0 %v1104_v11  ;;  %1038 = vmatpush3.bf16.msra.mxu1 %v1106_v13 }
  0x3a   : > { %999 = vmatprep.subr.bf16.mxu0 %v1105_v12  ;;  %1039 = vmatprep.subr.bf16.mxu1 %v1169_v0  ;;  %v315_v35 = vsel %vm314_vm5, 0, %v310_v32  ;;  %v322_v36 = vsel %vm321_vm6, %v317_v33, 0 }
  0x3d   : > { %1000 = vmatpush3.bf16.msra.mxu0 %v1107_v14  ;;  %1040 = vmatpush3.bf16.msra.mxu1 %v1109_v16 }
  0x3e   : > { %1001 = vmatprep.subr.bf16.mxu0 %v1108_v15  ;;  %1041 = vmatprep.subr.bf16.mxu1 %v1169_v0 }
  0x41   : > { %1002 = vmatpush3.bf16.msra.mxu0 %v1110_v17  ;;  %1042 = vmatpush3.bf16.msra.mxu1 %v1112_v19 }
  0x42   : > { %1003 = vmatprep.subr.bf16.mxu0 %v1111_v18  ;;  %1043 = vmatprep.subr.bf16.mxu1 %v1169_v0 }
  0x45   : > { %1004 = vmatpush3.bf16.msra.mxu0 %v1113_v20  ;;  %1044 = vmatpush3.bf16.msra.mxu1 %v1115_v25 }
  0x46   : > { %1005 = vmatprep.subr.bf16.mxu0 %v1114_v23  ;;  %1045 = vmatprep.subr.bf16.mxu1 %v1169_v0 }
  0x49   : > { %1006 = vmatpush3.bf16.msra.mxu0 %v1116_v26  ;;  %1046 = vmatpush3.bf16.msra.mxu1 %v1117_v30 }
  0x4a   : > { %1051 = vmatprep.subr.bf16.mxu0 %v1169_v0 }
  0x4c   : > { %548 = vmatmul.mubr.bf16.vlgmr.msra.gmra.mrb[0].mxu0 %v315_v35  ;;  %1048 = vmatmul.mubr.bf16.vlgmr.msra.gmra.mrb[0].mxu1 %v322_v36 }
  0x4d   : > { %1052 = vmatpush3.bf16.msra.mxu0 %v1118_v34  ;;  %1067 = vmatprep.mubr.msk.bf16.mxu0 %vm1170_vm0, %v1169_v0 }
  0x4e   : > { %1053 = vmatprep.subr.bf16.mxu0 %v1169_v0 }
  0x51   : > { %1054 = vmatpush3.bf16.msra.mxu0 %v1119_v37 }
  0x52   : > { %1055 = vmatprep.subr.bf16.mxu0 %v1169_v0 }
  0x55   : > { %1056 = vmatpush3.bf16.msra.mxu0 %v1120_v38 }
  0x56   : > { %1057 = vmatprep.subr.bf16.mxu0 %v1169_v0 }
  0x59   : > { %1058 = vmatpush3.bf16.msra.mxu0 %v1121_v39 }
  0x5a   : > { %1059 = vmatprep.subr.bf16.mxu0 %v1169_v0 }
  0x5d   : > { %1060 = vmatpush3.bf16.msra.mxu0 %v1122_v40 }
  0x5e   : > { %1061 = vmatprep.subr.bf16.mxu0 %v1169_v0 }
  0x61   : > { %1062 = vmatpush3.bf16.msra.mxu0 %v1123_v41 }
  0x62   : > { %1063 = vmatprep.subr.bf16.mxu0 %v1169_v0 }
  0x65   : > { %1064 = vmatpush3.bf16.msra.mxu0 %v1124_v42 }
  0x66   : > { %1065 = vmatprep.subr.bf16.mxu0 %v1169_v0 }
  0x69   : > { %1066 = vmatpush3.bf16.msra.mxu0 %v1125_v43 }
  0x6c   : > { %1068 = vmatmul.mubr.bf16.vlgmr.msra.gmra.mrb[4].mxu0 %v303_v24 }
 0x11f   : > { %v1007_v44 = vpop.f32.mrb[0].mxu0  ;;  %v590_v48 = vpop.f32.mrb[0].mxu1 }
 0x120   : > { %v1008_v45 = vpop.f32.mrb[1].mxu0  ;;  %v1049_v50 = vpop.f32.mrb[1].mxu1 }
 0x121   : > { %v1009_v46 = vadd.f32 %v1008_v45, %v1007_v44  ;;  %v1010_v47 = vpop.f32.mrb[2].mxu0  ;;  %v593_v53 = vpop.f32.mrb[2].mxu1 }
 0x122   : > { %v1011_v49 = vpop.f32.mrb[3].mxu0  ;;  %v1050_v54 = vpop.f32.mrb[3].mxu1 }
 0x123   : > { %v1012_v51 = vadd.f32 %v1011_v49, %v1010_v47  ;;  %v591_v52 = vadd.f32 %v1009_v46, %v590_v48 }
 0x125   : > { %v594_v55 = vadd.f32 %v1012_v51, %v593_v53  ;;  %v614_v56 = vmul.f32 %v591_v52, %v591_v52 }
 0x127   : > { %v984_v57 = vpack.c.bf16 %v594_v55, %v591_v52  ;;  %v607_v58 = vadd.f32 %v594_v55, %v591_v52  ;;  %v615_v59 = vmul.f32 %v594_v55, %v594_v55 }
 0x129   : > { %985 = vst [vmem:[%s286_s16] sm:$0xff] %v984_v57   ;;  %v608_v60 = vrot.slane %v607_v58, 4  ;;  %v616_v61 = vadd.f32 %v615_v59, %v614_v56 }
 0x12b   : > { %v609_v62 = vadd.f32 %v608_v60, %v607_v58  ;;  %v617_v63 = vrot.slane %v616_v61, 4 }
 0x12d   : > { %v610_v0 = vrot.slane %v609_v62, 2  ;;  %v618_v1 = vadd.f32 %v617_v63, %v616_v61 }
 0x12f   : > { %v611_v2 = vadd.f32 %v610_v0, %v609_v62  ;;  %v619_v3 = vrot.slane %v618_v1, 2 }
 0x131   : > { %v612_v4 = vrot.slane %v611_v2, 1  ;;  %v620_v5 = vadd.f32 %v619_v3, %v618_v1 }
 0x133   : > { %v621_v6 = vrot.slane %v620_v5, 1  ;;  %v613_v7 = vadd.f32 %v612_v4, %v611_v2 }
 0x135   : > { %v622_v8 = vadd.f32 %v621_v6, %v620_v5 }
 0x137   : > { %v624_v9 = vsel %vm312_vm3, %v613_v7, %v622_v8 }
 0x138   : > { %625 = vst [vmem:[%s290_s20] sm:$0x3] %v624_v9 }
 0x13f   : > { %v724_v10 = vpop.f32.mrb[4].mxu0 }
 0x140   : > { %v1069_v11 = vpop.f32.mrb[5].mxu0  ;;  %v748_v13 = vmul.f32 %v724_v10, %v724_v10 }
 0x141   : > { %v727_v12 = vpop.f32.mrb[6].mxu0 }
 0x142   : > { %v989_v14 = vpack.c.bf16 %v727_v12, %v724_v10  ;;  %v741_v15 = vadd.f32 %v727_v12, %v724_v10  ;;  %v749_v16 = vmul.f32 %v727_v12, %v727_v12  ;;  %v1070_v17 = vpop.f32.mrb[7].mxu0 }
 0x144   : > { %990 = vst [vmem:[%s295_s25] sm:$0xff] %v989_v14   ;;  %v742_v18 = vrot.slane %v741_v15, 4  ;;  %v750_v19 = vadd.f32 %v749_v16, %v748_v13 }
 0x146   : > { %v743_v20 = vadd.f32 %v742_v18, %v741_v15  ;;  %v751_v21 = vrot.slane %v750_v19, 4 }
 0x148   : > { %v744_v22 = vrot.slane %v743_v20, 2  ;;  %v752_v23 = vadd.f32 %v751_v21, %v750_v19 }
 0x14a   : > { %v745_v24 = vadd.f32 %v744_v22, %v743_v20  ;;  %v753_v25 = vrot.slane %v752_v23, 2 }
 0x14c   : > { %v746_v26 = vrot.slane %v745_v24, 1  ;;  %v754_v27 = vadd.f32 %v753_v25, %v752_v23 }
 0x14e   : > { %v755_v28 = vrot.slane %v754_v27, 1  ;;  %v747_v29 = vadd.f32 %v746_v26, %v745_v24 }
 0x150   : > { %v756_v30 = vadd.f32 %v755_v28, %v754_v27 }
 0x152   : > { %v757_v31 = vsel %vm312_vm3, %v747_v29, %v756_v30 }
 0x153   : > { %758 = vst [vmem:[%s299_s27] sm:$0x3] %v757_v31 }
 0x154 PF: > { %s18_s21 = sadd.s32 1, %s1164_s21  }
 0x155   : > { %p15_p3 = scmp.ge.s32.totalorder %s18_s21, 4  }
 0x157   :  { %17 = sbr.rel (!%p15_p3) target bundleno = 1 (0x1), region = 103 }
 0x15e   :  { %824 = vsyncpa [#allocation3], 1 }
 0x15f   :  { %826 = vsyncpa [#allocation3 + $0x1], 1 }

// kernel: forward.9
= control target key start
LH: loop header
LB: loop body
LE: loop exit
PB: predicated region body
PF: predicated region fallthrough
CT: control target
= control target key end

     0   :  { %s756_s12 = smov 0   ;;  %s868_s0 = inlined_call_operand.vmem [shape: f32[2,16,128], index: 0, kind: input, shape index: {}]   ;;  %s869_s1 = inlined_call_operand.vmem [shape: bf16[384,128], index: 1, kind: input, shape index: {}]   ;;  %s870_s2 = inlined_call_operand.vmem [shape: bf16[2,16,128], index: 2, kind: output, shape index: {0}]   ;;  %s871_s3 = inlined_call_operand.vmem [shape: f32[2,2,128], index: 3, kind: output, shape index: {1}]  }
   0x1 LB: > { %s594_s13 = sadd.s32 4294967295, %s732_s12   ;;  %p598_p0 = scmp.ge.s32.totalorder %s732_s12, 1  ;;  %s732_s12 = sphi %s756_s12, %s14_s12  }
   0x2   : > { %p140_p1 = scmp.lt.s32.totalorder %s732_s12, 3 }
   0x4   : > { %p141_p2 = pnand %p598_p0, %p140_p1 }
   0x5   : > { %v702_v0 = vld [vmem:[%s869_s1 + $0x40] sm:$0xff] (!%p141_p2)   ;;  %v734_v1 = vmov (!%p141_p2), 0.0   ;;  %v705_v4 = vld [vmem:[%s869_s1 + $0x48] sm:$0xff] (!%p141_p2)   ;;  %vm735_vm0 = vmmov (!%p141_p2), 0   ;;  %v708_v7 = vld [vmem:[%s869_s1 + $0x50] sm:$0xff] (!%p141_p2)   ;;  %p168_p3 = scmp.lt.s32.totalorder (!%p141_p2), %s594_s13, 1 }
   0x6   : > { %144 = sbr.rel (%p141_p2) target bundleno = 275 (0x113), region = 28  ;;  %672 = vmatprep.subr.bf16.mxu1 (!%p141_p2), %v734_v1  ;;  %v703_v2 = vld [vmem:[%s869_s1] sm:$0xff] (!%p141_p2)   ;;  %641 = vmatprep.subr.bf16.mxu0 (!%p141_p2), %v702_v0  ;;  %v706_v5 = vld [vmem:[%s869_s1 + $0x8] sm:$0xff] (!%p141_p2)   ;;  %v709_v8 = vld [vmem:[%s869_s1 + $0x10] sm:$0xff] (!%p141_p2)   ;;  %vm194_vm1 = vcmask (!%p141_p2), 1040384   ;;  %vm201_vm3 = vcmask (!%p141_p2), 1047552  }
   0x7   : > { %v704_v3 = vld [vmem:[%s869_s1 + $0x80] sm:$0xff] (!%p141_p2)   ;;  %642 = vmatpush3.bf16.msra.mxu0 (!%p141_p2), %v703_v2  ;;  %688 = vmatprep.mubr.msk.bf16.mxu1 (!%p141_p2), %vm735_vm0, %v734_v1  ;;  %v707_v6 = vld [vmem:[%s869_s1 + $0x88] sm:$0xff] (!%p141_p2)   ;;  %v710_v9 = vld [vmem:[%s869_s1 + $0x90] sm:$0xff] (!%p141_p2)   ;;  %vm195_vm2 = vsmask.f32 (!%p141_p2), 256 }
   0x8   : > { %673 = vmatpush3.bf16.msra.mxu1 (!%p141_p2), %v704_v3  ;;  %643 = vmatprep.subr.bf16.mxu0 (!%p141_p2), %v705_v4  ;;  %v711_v10 = vld [vmem:[%s869_s1 + $0x58] sm:$0xff] (!%p141_p2)   ;;  %v714_v13 = vld [vmem:[%s869_s1 + $0x60] sm:$0xff] (!%p141_p2)   ;;  %v717_v16 = vld [vmem:[%s869_s1 + $0x68] sm:$0xff] (!%p141_p2)   ;;  %vm202_vm4 = vsmask.f32 (!%p141_p2), 7424 }
   0x9   : > { %674 = vmatprep.subr.bf16.mxu1 (!%p141_p2), %v734_v1  ;;  %v712_v11 = vld [vmem:[%s869_s1 + $0x18] sm:$0xff] (!%p141_p2)   ;;  %v715_v14 = vld [vmem:[%s869_s1 + $0x20] sm:$0xff] (!%p141_p2)   ;;  %v718_v17 = vld [vmem:[%s869_s1 + $0x28] sm:$0xff] (!%p141_p2)  }
   0xa   : > { %v713_v12 = vld [vmem:[%s869_s1 + $0x98] sm:$0xff] (!%p141_p2)   ;;  %v716_v15 = vld [vmem:[%s869_s1 + $0xa0] sm:$0xff] (!%p141_p2)   ;;  %v719_v18 = vld [vmem:[%s869_s1 + $0xa8] sm:$0xff] (!%p141_p2)  }
   0xb   : > { %644 = vmatpush3.bf16.msra.mxu0 (!%p141_p2), %v706_v5  ;;  %v720_v19 = vld [vmem:[%s869_s1 + $0x70] sm:$0xff] (!%p141_p2)   ;;  %v723_v22 = vld [vmem:[%s869_s1 + $0x78] sm:$0xff] (!%p141_p2)   ;;  %vm196_vm5 = vmand (!%p141_p2), %vm194_vm1, %vm195_vm2 }
   0xc   : > { %675 = vmatpush3.bf16.msra.mxu1 (!%p141_p2), %v707_v6  ;;  %645 = vmatprep.subr.bf16.mxu0 (!%p141_p2), %v708_v7  ;;  %v721_v20 = vld [vmem:[%s869_s1 + $0x30] sm:$0xff] (!%p141_p2)   ;;  %v724_v26 = vld [vmem:[%s869_s1 + $0x38] sm:$0xff] (!%p141_p2)   ;;  %vm203_vm6 = vmand (!%p141_p2), %vm201_vm3, %vm202_vm4 }
   0xd   : > { %676 = vmatprep.subr.bf16.mxu1 %v734_v1  ;;  %s873_s13 = smov (!%p168_p3, %s594_s13), 1  ;;  %v722_v21 = vld [vmem:[%s869_s1 + $0xb0] sm:$0xff]   ;;  %v725_v29 = vld [vmem:[%s869_s1 + $0xb8] sm:$0xff]  }
   0xe   : > { %s632_s23 = sshll.u32 %s873_s13, 4  ;;  %s633_s16 = sshll.u32 %s873_s13, 3 }
   0xf   : > { %646 = vmatpush3.bf16.msra.mxu0 %v709_v8  ;;  %s172_s30 = scalar_lea.vmem %s868_s0, %s632_s23  ;;  %s177_s19 = scalar_lea.vmem %s870_s2, %s633_s16 }
  0x10   : > { %677 = vmatpush3.bf16.msra.mxu1 %v710_v9  ;;  %647 = vmatprep.subr.bf16.mxu0 %v711_v10  ;;  %v183_v23 = vld [vmem:[%s172_s30] sm:$0xff]  ;;  %v184_v24 = vld [vmem:[%s172_s30 + $0x8] sm:$0xff]  ;;  %s603_s20 = sshll.u32 %s873_s13, 1 }
  0x11   : > { %678 = vmatprep.subr.bf16.mxu1 %v734_v1  ;;  %v185_v25 = vpack.c.bf16 %v184_v24, %v183_v23  ;;  %s181_s23 = scalar_lea.vmem %s871_s3, %s603_s20 }
  0x13   : > { %648 = vmatpush3.bf16.msra.mxu0 %v712_v11  ;;  %429 = vmatprep.mubr.bf16.mxu0 %v185_v25  ;;  %v187_v27 = vshrl.u32 %v185_v25, 16  ;;  %v190_v28 = vshll.u32 %v185_v25, 16 }
  0x14   : > { %679 = vmatpush3.bf16.msra.mxu1 %v713_v12  ;;  %649 = vmatprep.subr.bf16.mxu0 %v714_v13 }
  0x15   : > { %680 = vmatprep.subr.bf16.mxu1 %v734_v1  ;;  %v189_v30 = vrot.slane %v187_v27, 7  ;;  %v198_v31 = vrot.slane %v190_v28, 1 }
  0x17   : > { %650 = vmatpush3.bf16.msra.mxu0 %v715_v14  ;;  %v192_v32 = vor.u32 %v190_v28, %v189_v30  ;;  %v199_v33 = vor.u32 %v198_v31, %v187_v27 }
  0x18   : > { %681 = vmatpush3.bf16.msra.mxu1 %v716_v15  ;;  %651 = vmatprep.subr.bf16.mxu0 %v717_v16 }
  0x19   : > { %682 = vmatprep.subr.bf16.mxu1 %v734_v1  ;;  %v197_v34 = vsel %vm196_vm5, 0, %v192_v32  ;;  %v204_v35 = vsel %vm203_vm6, %v199_v33, 0 }
  0x1b   : > { %652 = vmatpush3.bf16.msra.mxu0 %v718_v17 }
  0x1c   : > { %683 = vmatpush3.bf16.msra.mxu1 %v719_v18  ;;  %653 = vmatprep.subr.bf16.mxu0 %v720_v19 }
  0x1d   : > { %684 = vmatprep.subr.bf16.mxu1 %v734_v1 }
  0x1f   : > { %654 = vmatpush3.bf16.msra.mxu0 %v721_v20 }
  0x20   : > { %685 = vmatpush3.bf16.msra.mxu1 %v722_v21  ;;  %655 = vmatprep.subr.bf16.mxu0 %v723_v22 }
  0x21   : > { %686 = vmatprep.subr.bf16.mxu1 %v734_v1 }
  0x23   : > { %656 = vmatpush3.bf16.msra.mxu0 %v724_v26 }
  0x24   : > { %687 = vmatpush3.bf16.msra.mxu1 %v725_v29 }
  0x26   : > { %430 = vmatmul.mubr.bf16.vlgmr.msra.gmra.mrb[0].mxu0 %v197_v34 }
  0x27   : > { %689 = vmatmul.mubr.bf16.vlgmr.msra.gmra.mrb[0].mxu1 %v204_v35 }
  0xf9   : > { %v657_v36 = vpop.f32.mrb[0].mxu0 }
  0xfa   : > { %v472_v37 = vpop.f32.mrb[0].mxu1  ;;  %v658_v38 = vpop.f32.mrb[1].mxu0 }
  0xfb   : > { %v659_v39 = vadd.f32 %v658_v38, %v657_v36  ;;  %v690_v40 = vpop.f32.mrb[1].mxu1  ;;  %v660_v41 = vpop.f32.mrb[2].mxu0 }
  0xfc   : > { %v475_v42 = vpop.f32.mrb[2].mxu1  ;;  %v661_v43 = vpop.f32.mrb[3].mxu0 }
  0xfd   : > { %v473_v44 = vadd.f32 %v659_v39, %v472_v37  ;;  %v662_v45 = vadd.f32 %v661_v43, %v660_v41  ;;  %v691_v46 = vpop.f32.mrb[3].mxu1 }
  0xff   : > { %v476_v47 = vadd.f32 %v662_v45, %v475_v42  ;;  %v496_v48 = vmul.f32 %v473_v44, %v473_v44 }
 0x101   : > { %v639_v49 = vpack.c.bf16 %v476_v47, %v473_v44  ;;  %v489_v50 = vadd.f32 %v476_v47, %v473_v44  ;;  %v497_v51 = vmul.f32 %v476_v47, %v476_v47 }
 0x103   : > { %640 = vst [vmem:[%s177_s19] sm:$0xff] %v639_v49   ;;  %v490_v52 = vrot.slane %v489_v50, 4  ;;  %v498_v53 = vadd.f32 %v497_v51, %v496_v48 }
 0x105   : > { %v491_v54 = vadd.f32 %v490_v52, %v489_v50  ;;  %v499_v55 = vrot.slane %v498_v53, 4 }
 0x107   : > { %v492_v56 = vrot.slane %v491_v54, 2  ;;  %v500_v57 = vadd.f32 %v499_v55, %v498_v53 }
 0x109   : > { %v493_v58 = vadd.f32 %v492_v56, %v491_v54  ;;  %v501_v59 = vrot.slane %v500_v57, 2 }
 0x10b   : > { %v494_v60 = vrot.slane %v493_v58, 1  ;;  %v502_v61 = vadd.f32 %v501_v59, %v500_v57 }
 0x10d   : > { %v503_v62 = vrot.slane %v502_v61, 1  ;;  %v495_v63 = vadd.f32 %v494_v60, %v493_v58 }
 0x10f   : > { %v504_v0 = vadd.f32 %v503_v62, %v502_v61 }
 0x111   : > { %v506_v1 = vsel %vm194_vm1, %v495_v63, %v504_v0 }
 0x112   : > { %507 = vst [vmem:[%s181_s23] sm:$0x3] %v506_v1 }
 0x113 PF: > { %s14_s12 = sadd.s32 1, %s732_s12  }
 0x114   : > { %p11_p4 = scmp.ge.s32.totalorder %s14_s12, 4  }
 0x116   :  { %13 = sbr.rel (!%p11_p4) target bundleno = 1 (0x1), region = 70 }

// kernel: forward.7
= control target key start
LH: loop header
LB: loop body
LE: loop exit
PB: predicated region body
PF: predicated region fallthrough
CT: control target
= control target key end

     0   :  { %s850_s18 = smov 0   ;;  %s971_s0 = inlined_call_operand.vmem [shape: bf16[2,16,128], index: 0, kind: input, shape index: {}]   ;;  %s972_s1 = inlined_call_operand.vmem [shape: f32[1,128], index: 1, kind: input, shape index: {}]   ;;  %s973_s2 = inlined_call_operand.vmem [shape: f32[1,128], index: 2, kind: input, shape index: {}]   ;;  %s974_s3 = inlined_call_operand.vmem [shape: bf16[384,128], index: 3, kind: input, shape index: {}]   ;;  %s975_s4 = inlined_call_operand.vmem [shape: bf16[2,16,128], index: 4, kind: output, shape index: {0}]   ;;  %s976_s5 = inlined_call_operand.vmem [shape: f32[2,2,128], index: 5, kind: output, shape index: {1}]  }
   0x1 LB: > { %s672_s19 = sadd.s32 4294967295, %s816_s18   ;;  %p676_p0 = scmp.ge.s32.totalorder %s816_s18, 1  ;;  %s816_s18 = sphi %s850_s18, %s16_s18  }
   0x2   : > { %p190_p1 = scmp.lt.s32.totalorder %s816_s18, 3 }
   0x4   : > { %p191_p2 = pnand %p676_p0, %p190_p1 }
   0x5   : > { %v786_v0 = vld [vmem:[%s974_s3 + $0x40] sm:$0xff] (!%p191_p2)   ;;  %v818_v1 = vmov (!%p191_p2), 0.0   ;;  %v789_v4 = vld [vmem:[%s974_s3 + $0x48] sm:$0xff] (!%p191_p2)   ;;  %vm819_vm0 = vmmov (!%p191_p2), 0   ;;  %v792_v7 = vld [vmem:[%s974_s3 + $0x50] sm:$0xff] (!%p191_p2)   ;;  %p222_p3 = scmp.lt.s32.totalorder (!%p191_p2), %s672_s19, 1 }
   0x6   : > { %194 = sbr.rel (%p191_p2) target bundleno = 275 (0x113), region = 36  ;;  %756 = vmatprep.subr.bf16.mxu1 (!%p191_p2), %v818_v1  ;;  %v787_v2 = vld [vmem:[%s974_s3] sm:$0xff] (!%p191_p2)   ;;  %725 = vmatprep.subr.bf16.mxu0 (!%p191_p2), %v786_v0  ;;  %v790_v5 = vld [vmem:[%s974_s3 + $0x8] sm:$0xff] (!%p191_p2)   ;;  %v793_v8 = vld [vmem:[%s974_s3 + $0x10] sm:$0xff] (!%p191_p2)   ;;  %vm272_vm1 = vcmask (!%p191_p2), 1040384   ;;  %vm279_vm3 = vcmask (!%p191_p2), 1047552  }
   0x7   : > { %v788_v3 = vld [vmem:[%s974_s3 + $0x80] sm:$0xff] (!%p191_p2)   ;;  %726 = vmatpush3.bf16.msra.mxu0 (!%p191_p2), %v787_v2  ;;  %772 = vmatprep.mubr.msk.bf16.mxu1 (!%p191_p2), %vm819_vm0, %v818_v1  ;;  %v791_v6 = vld [vmem:[%s974_s3 + $0x88] sm:$0xff] (!%p191_p2)   ;;  %v794_v9 = vld [vmem:[%s974_s3 + $0x90] sm:$0xff] (!%p191_p2)   ;;  %vm273_vm2 = vsmask.f32 (!%p191_p2), 256 }
   0x8   : > { %757 = vmatpush3.bf16.msra.mxu1 (!%p191_p2), %v788_v3  ;;  %727 = vmatprep.subr.bf16.mxu0 (!%p191_p2), %v789_v4  ;;  %v795_v10 = vld [vmem:[%s974_s3 + $0x58] sm:$0xff] (!%p191_p2)   ;;  %v798_v13 = vld [vmem:[%s974_s3 + $0x60] sm:$0xff] (!%p191_p2)   ;;  %v801_v16 = vld [vmem:[%s974_s3 + $0x68] sm:$0xff] (!%p191_p2)   ;;  %vm280_vm4 = vsmask.f32 (!%p191_p2), 7424 }
   0x9   : > { %758 = vmatprep.subr.bf16.mxu1 (!%p191_p2), %v818_v1  ;;  %v796_v11 = vld [vmem:[%s974_s3 + $0x18] sm:$0xff] (!%p191_p2)   ;;  %v799_v14 = vld [vmem:[%s974_s3 + $0x20] sm:$0xff] (!%p191_p2)   ;;  %v802_v17 = vld [vmem:[%s974_s3 + $0x28] sm:$0xff] (!%p191_p2)  }
   0xa   : > { %v797_v12 = vld [vmem:[%s974_s3 + $0x98] sm:$0xff] (!%p191_p2)   ;;  %v800_v15 = vld [vmem:[%s974_s3 + $0xa0] sm:$0xff] (!%p191_p2)   ;;  %v803_v18 = vld [vmem:[%s974_s3 + $0xa8] sm:$0xff] (!%p191_p2)  }
   0xb   : > { %728 = vmatpush3.bf16.msra.mxu0 (!%p191_p2), %v790_v5  ;;  %v804_v19 = vld [vmem:[%s974_s3 + $0x70] sm:$0xff] (!%p191_p2)   ;;  %v807_v22 = vld [vmem:[%s974_s3 + $0x78] sm:$0xff] (!%p191_p2)   ;;  %v682_v24 = vld [vmem:[%s972_s1] ss:$0 sm:$0xff] (!%p191_p2) }
   0xc   : > { %759 = vmatpush3.bf16.msra.mxu1 (!%p191_p2), %v791_v6  ;;  %729 = vmatprep.subr.bf16.mxu0 (!%p191_p2), %v792_v7  ;;  %v805_v20 = vld [vmem:[%s974_s3 + $0x30] sm:$0xff] (!%p191_p2)   ;;  %v683_v27 = vld [vmem:[%s973_s2] ss:$0 sm:$0xff] (!%p191_p2)  ;;  %v808_v28 = vld [vmem:[%s974_s3 + $0x38] sm:$0xff] (!%p191_p2)  }
   0xd   : > { %760 = vmatprep.subr.bf16.mxu1 %v818_v1  ;;  %s978_s19 = smov (!%p222_p3, %s672_s19), 1  ;;  %v806_v21 = vld [vmem:[%s974_s3 + $0xb0] sm:$0xff]   ;;  %v809_v31 = vld [vmem:[%s974_s3 + $0xb8] sm:$0xff]   ;;  %vm274_vm5 = vmand %vm272_vm1, %vm273_vm2 }
   0xe   : > { %s712_s6 = sshll.u32 %s978_s19, 3  ;;  %vm281_vm6 = vmand %vm279_vm3, %vm280_vm4  ;;  %s681_s9 = sshll.u32 %s978_s19, 1 }
   0xf   : > { %730 = vmatpush3.bf16.msra.mxu0 %v793_v8  ;;  %s226_s13 = scalar_lea.vmem %s971_s0, %s712_s6  ;;  %s231_s8 = scalar_lea.vmem %s975_s4, %s712_s6 }
  0x10   : > { %761 = vmatpush3.bf16.msra.mxu1 %v794_v9  ;;  %731 = vmatprep.subr.bf16.mxu0 %v795_v10  ;;  %v717_v23 = vld [vmem:[%s226_s13] sm:$0xff]   ;;  %s235_s11 = scalar_lea.vmem %s976_s5, %s681_s9 }
  0x11   : > { %762 = vmatprep.subr.bf16.mxu1 %v818_v1  ;;  %v718_v25 = vunpack.c.l.bf16 %v717_v23  ;;  %v719_v26 = vunpack.c.h.bf16 %v717_v23 }
  0x13   : > { %732 = vmatpush3.bf16.msra.mxu0 %v796_v11  ;;  %v248_v29 = vmul.f32 %v718_v25, %v682_v24  ;;  %v249_v30 = vmul.f32 %v719_v26, %v682_v24 }
  0x14   : > { %763 = vmatpush3.bf16.msra.mxu1 %v797_v12  ;;  %733 = vmatprep.subr.bf16.mxu0 %v798_v13 }
  0x15   : > { %764 = vmatprep.subr.bf16.mxu1 %v818_v1  ;;  %v257_v32 = vadd.f32 %v683_v27, %v248_v29  ;;  %v258_v33 = vadd.f32 %v683_v27, %v249_v30 }
  0x17   : > { %734 = vmatpush3.bf16.msra.mxu0 %v799_v14  ;;  %v259_v34 = vmul.f32 0.2, %v257_v32  ;;  %v260_v35 = vmul.f32 0.2, %v258_v33 }
  0x18   : > { %765 = vmatpush3.bf16.msra.mxu1 %v800_v15  ;;  %735 = vmatprep.subr.bf16.mxu0 %v801_v16 }
  0x19   : > { %766 = vmatprep.subr.bf16.mxu1 %v818_v1  ;;  %v261_v36 = vmax.f32 %v257_v32, %v259_v34  ;;  %v262_v37 = vmax.f32 %v258_v33, %v260_v35 }
  0x1b   : > { %736 = vmatpush3.bf16.msra.mxu0 %v802_v17  ;;  %v263_v38 = vpack.c.bf16 %v262_v37, %v261_v36 }
  0x1c   : > { %767 = vmatpush3.bf16.msra.mxu1 %v803_v18  ;;  %737 = vmatprep.subr.bf16.mxu0 %v804_v19 }
  0x1d   : > { %768 = vmatprep.subr.bf16.mxu1 %v818_v1  ;;  %507 = vmatprep.mubr.bf16.mxu0 %v263_v38  ;;  %v265_v39 = vshrl.u32 %v263_v38, 16  ;;  %v268_v40 = vshll.u32 %v263_v38, 16 }
  0x1f   : > { %738 = vmatpush3.bf16.msra.mxu0 %v805_v20  ;;  %v267_v41 = vrot.slane %v265_v39, 7  ;;  %v276_v42 = vrot.slane %v268_v40, 1 }
  0x20   : > { %769 = vmatpush3.bf16.msra.mxu1 %v806_v21  ;;  %739 = vmatprep.subr.bf16.mxu0 %v807_v22 }
  0x21   : > { %770 = vmatprep.subr.bf16.mxu1 %v818_v1  ;;  %v270_v43 = vor.u32 %v268_v40, %v267_v41  ;;  %v277_v44 = vor.u32 %v276_v42, %v265_v39 }
  0x23   : > { %740 = vmatpush3.bf16.msra.mxu0 %v808_v28  ;;  %v275_v45 = vsel %vm274_vm5, 0, %v270_v43  ;;  %v282_v46 = vsel %vm281_vm6, %v277_v44, 0 }
  0x24   : > { %771 = vmatpush3.bf16.msra.mxu1 %v809_v31 }
  0x26   : > { %508 = vmatmul.mubr.bf16.vlgmr.msra.gmra.mrb[0].mxu0 %v275_v45 }
  0x27   : > { %773 = vmatmul.mubr.bf16.vlgmr.msra.gmra.mrb[0].mxu1 %v282_v46 }
  0xf9   : > { %v741_v47 = vpop.f32.mrb[0].mxu0 }
  0xfa   : > { %v550_v48 = vpop.f32.mrb[0].mxu1  ;;  %v742_v49 = vpop.f32.mrb[1].mxu0 }
  0xfb   : > { %v774_v50 = vpop.f32.mrb[1].mxu1  ;;  %v743_v51 = vadd.f32 %v742_v49, %v741_v47  ;;  %v744_v52 = vpop.f32.mrb[2].mxu0 }
  0xfc   : > { %v553_v53 = vpop.f32.mrb[2].mxu1  ;;  %v745_v54 = vpop.f32.mrb[3].mxu0 }
  0xfd   : > { %v775_v55 = vpop.f32.mrb[3].mxu1  ;;  %v551_v56 = vadd.f32 %v743_v51, %v550_v48  ;;  %v746_v57 = vadd.f32 %v745_v54, %v744_v52 }
  0xff   : > { %v554_v58 = vadd.f32 %v746_v57, %v553_v53  ;;  %v574_v59 = vmul.f32 %v551_v56, %v551_v56 }
 0x101   : > { %v723_v60 = vpack.c.bf16 %v554_v58, %v551_v56  ;;  %v567_v61 = vadd.f32 %v554_v58, %v551_v56  ;;  %v575_v62 = vmul.f32 %v554_v58, %v554_v58 }
 0x103   : > { %724 = vst [vmem:[%s231_s8] sm:$0xff] %v723_v60   ;;  %v568_v63 = vrot.slane %v567_v61, 4  ;;  %v576_v0 = vadd.f32 %v575_v62, %v574_v59 }
 0x105   : > { %v569_v1 = vadd.f32 %v568_v63, %v567_v61  ;;  %v577_v2 = vrot.slane %v576_v0, 4 }
 0x107   : > { %v570_v3 = vrot.slane %v569_v1, 2  ;;  %v578_v4 = vadd.f32 %v577_v2, %v576_v0 }
 0x109   : > { %v571_v5 = vadd.f32 %v570_v3, %v569_v1  ;;  %v579_v6 = vrot.slane %v578_v4, 2 }
 0x10b   : > { %v572_v7 = vrot.slane %v571_v5, 1  ;;  %v580_v8 = vadd.f32 %v579_v6, %v578_v4 }
 0x10d   : > { %v581_v9 = vrot.slane %v580_v8, 1  ;;  %v573_v10 = vadd.f32 %v572_v7, %v571_v5 }
 0x10f   : > { %v582_v11 = vadd.f32 %v581_v9, %v580_v8 }
 0x111   : > { %v584_v12 = vsel %vm272_vm1, %v573_v10, %v582_v11 }
 0x112   : > { %585 = vst [vmem:[%s235_s11] sm:$0x3] %v584_v12 }
 0x113 PF: > { %s16_s18 = sadd.s32 1, %s816_s18  }
 0x114   : > { %p13_p4 = scmp.ge.s32.totalorder %s16_s18, 4  }
 0x116   :  { %15 = sbr.rel (!%p13_p4) target bundleno = 1 (0x1), region = 78 }

// kernel: forward.11
= control target key start
LH: loop header
LB: loop body
LE: loop exit
PB: predicated region body
PF: predicated region fallthrough
CT: control target
= control target key end

     0   :  { %s382_s15 = smov 0   ;;  %s408_s0 = inlined_call_operand.vmem [shape: bf16[2,16,128], index: 0, kind: input, shape index: {}]   ;;  %s409_s1 = inlined_call_operand.vmem [shape: f32[1,128], index: 1, kind: input, shape index: {}]   ;;  %s410_s2 = inlined_call_operand.vmem [shape: f32[1,128], index: 2, kind: input, shape index: {}]   ;;  %s411_s3 = inlined_call_operand.vmem [shape: f32[2,16,128], index: 3, kind: input, shape index: {}]   ;;  %s412_s4 = inlined_call_operand.vmem [shape: f32[2,16,128], index: 4, kind: output, shape index: {}]  }
   0x1 LB: > { %s319_s16 = sadd.s32 4294967295, %s355_s15   ;;  %p323_p0 = scmp.ge.s32.totalorder %s355_s15, 1  ;;  %s355_s15 = sphi %s382_s15, %s14_s15  }
   0x2   : > { %p172_p1 = scmp.lt.s32.totalorder %s355_s15, 3 }
   0x4   : > { %p173_p2 = pnand %p323_p0, %p172_p1 }
   0x5   : > { %p203_p3 = scmp.lt.s32.totalorder (!%p173_p2), %s319_s16, 1  ;;  %v330_v1 = vld [vmem:[%s409_s1] ss:$0 sm:$0xff] (!%p173_p2) }
   0x6   : > { %176 = sbr.rel (%p173_p2) target bundleno = 32 (0x20), region = 36  ;;  %v331_v4 = vld [vmem:[%s410_s2] ss:$0 sm:$0xff] (!%p173_p2) }
   0xd   : > { %s414_s16 = smov (!%p203_p3, %s319_s16), 1 }
   0xe   : > { %s334_s17 = sshll.u32 %s414_s16, 3  ;;  %s335_s21 = sshll.u32 %s414_s16, 4 }
   0xf   : > { %s207_s20 = scalar_lea.vmem %s408_s0, %s334_s17  ;;  %s212_s28 = scalar_lea.vmem %s411_s3, %s335_s21 }
  0x10   : > { %v338_v0 = vld [vmem:[%s207_s20] sm:$0xff]   ;;  %v241_v10 = vld [vmem:[%s212_s28 + $0x8] sm:$0xff]  ;;  %s217_s5 = scalar_lea.vmem %s412_s4, %s335_s21 }
  0x11   : > { %v339_v2 = vunpack.c.l.bf16 %v338_v0  ;;  %v340_v3 = vunpack.c.h.bf16 %v338_v0  ;;  %v240_v9 = vld [vmem:[%s212_s28] sm:$0xff] }
  0x13   : > { %v229_v5 = vmul.f32 %v339_v2, %v330_v1  ;;  %v230_v6 = vmul.f32 %v340_v3, %v330_v1 }
  0x15   : > { %v238_v7 = vadd.f32 %v331_v4, %v229_v5  ;;  %v239_v8 = vadd.f32 %v331_v4, %v230_v6 }
  0x17   : > { %v242_v11 = vmul.f32 0.1, %v238_v7  ;;  %v243_v12 = vmul.f32 0.1, %v239_v8 }
  0x19   : > { %v244_v13 = vadd.f32 %v242_v11, %v240_v9  ;;  %v245_v14 = vadd.f32 %v243_v12, %v241_v10 }
  0x1b   : > { %v246_v15 = vmul.f32 0.2, %v244_v13  ;;  %v247_v16 = vmul.f32 0.2, %v245_v14 }
  0x1d   : > { %v248_v17 = vmax.f32 %v244_v13, %v246_v15  ;;  %v249_v18 = vmax.f32 %v245_v14, %v247_v16 }
  0x1f   : > { %250 = vst [vmem:[%s217_s5] sm:$0xff] %v248_v17  ;;  %251 = vst [vmem:[%s217_s5 + $0x8] sm:$0xff] %v249_v18 }
  0x20 PF: > { %s14_s15 = sadd.s32 1, %s355_s15  }
  0x21   : > { %p11_p4 = scmp.ge.s32.totalorder %s14_s15, 4  }
  0x23   :  { %13 = sbr.rel (!%p11_p4) target bundleno = 1 (0x1), region = 69 }

</bundles_post_ra>
